<compile_context>
chip_gen: v6e
topology: v6e:2x2x1
jax: 0.10.0
libtpu: 0.0.40
codegen_flags: <defaults>
</compile_context>

<pallas_src>
import numpy as np
import jax
import jax.numpy as jnp
from jax import lax
from jax.experimental import pallas as pl
from jax.experimental.pallas import tpu as pltpu

# ---- small synthetic config (consistent with the module's hidden/intermediate/head structure) ----
BATCH = 4                                # independent sequences
SEQ = 8
HIDDEN = 32
NUM_HEADS = 4
HEAD_DIM = HIDDEN // NUM_HEADS           # 8
INTERMEDIATE = 64
VOCAB = 128
MAX_POS = 64

# Grid steps over the batch.  1 = fully collapsed (best on single-TC v5e/v6e: one 128-row attention
# matmul, zero extra pipeline steps).  Set to 2 on v7x so both TensorCores get a "parallel" step.
GRID_STEPS = 1
assert BATCH % GRID_STEPS == 0


def _rotate_half_matrix():
    """Exact signed-permutation matrix R with rot(t) = t @ R == per-head concat(-t2, t1)."""
    half = HEAD_DIM // 2
    R = np.zeros((HIDDEN, HIDDEN), np.float32)
    for h in range(NUM_HEADS):
        base = h * HEAD_DIM
        for j in range(half):
            R[base + half + j, base + j] = -1.0   # out first half  <- -(in second half)
            R[base + j, base + half + j] = 1.0    # out second half <-  (in first half)
    return jnp.asarray(R)


ROT_HALF = _rotate_half_matrix()


def fused_prm_kernel(xrep_ref, cosm_ref, sinm_ref, vmask_ref, bias_ref,
                     wqkv_ref, wtail_ref, btail_ref, out_ref):
    """One grid step = B_BLK full sequences, stacked as (b, h, s) rows along sublanes."""
    rows = xrep_ref.shape[0]                         # B_BLK * NUM_HEADS * SEQ
    b_blk = rows // (NUM_HEADS * SEQ)

    # 1) Single fused projection for all stacked rows: [q | k | v | q@R | k@R].
    #    1/sqrt(head_dim) is pre-folded into the q / q@R weight columns.
    qkv = jnp.dot(xrep_ref[...], wqkv_ref[...],
                  preferred_element_type=jnp.float32)            # (rows, 5H) f32

    cosm = cosm_ref[...]                                         # head-masked cos (rows, H) f32
    sinm = sinm_ref[...]                                         # head-masked sin (rows, H) f32

    # 2) RoPE + per-head column selection in one FMA pair (f32 elementwise).
    q = qkv[:, 0 * HIDDEN:1 * HIDDEN] * cosm + qkv[:, 3 * HIDDEN:4 * HIDDEN] * sinm
    k = qkv[:, 1 * HIDDEN:2 * HIDDEN] * cosm + qkv[:, 4 * HIDDEN:5 * HIDDEN] * sinm
    v = qkv[:, 2 * HIDDEN:3 * HIDDEN] * vmask_ref[...]           # zero non-own-head columns

    # 3) One big masked score matmul over all (batch, head) blocks at once.
    #    Cross-head row pairs dot to exactly 0 (disjoint nonzero columns); cross-batch /
    #    non-causal pairs are killed by the precomputed block-diagonal additive bias.
    s = lax.dot_general(q.astype(jnp.bfloat16), k.astype(jnp.bfloat16),
                        (((1,), (1,)), ((), ())),
                        preferred_element_type=jnp.float32)      # (rows, rows) f32
    s = s + bias_ref[...]
    s = s - jnp.max(s, axis=-1, keepdims=True)
    p = jnp.exp(s)
    p = p * pl.reciprocal(jnp.sum(p, axis=-1, keepdims=True), approx=True)   # EUP recip

    # 4) One ctx matmul.  V is head-column masked, so each (b, h, s) row only accumulates its own
    #    head's value columns.
    ctx = jnp.dot(p.astype(jnp.bfloat16), v.astype(jnp.bfloat16),
                  preferred_element_type=jnp.float32)            # (rows, H) f32

    # 5) Collapse the head axis: rows are ordered (b, h, s), so per-sequence head groups are
    #    contiguous, sublane-aligned (multiples of 8) static slices -> cheap adds + sublane concat
    #    (no lane-axis concatenate, no relayout).
    seg = NUM_HEADS * SEQ
    per_b = []
    for b in range(b_blk):
        acc = ctx[b * seg + 0 * SEQ: b * seg + 1 * SEQ, :]
        for h in range(1, NUM_HEADS):
            acc = acc + ctx[b * seg + h * SEQ: b * seg + (h + 1) * SEQ, :]
        per_b.append(acc)
    ctx_all = per_b[0] if b_blk == 1 else jnp.concatenate(per_b, axis=0)     # (b_blk*SEQ, H)

    # 6) Fully collapsed tail (wo @ (wprm + w1@w2)): one matmul + one bias add.
    out = jnp.dot(ctx_all.astype(jnp.bfloat16), wtail_ref[...],
                  preferred_element_type=jnp.float32) + btail_ref[...]
    out_ref[...] = out.astype(out_ref.dtype)


def build_params(key):
    ks = jax.random.split(key, 12)
    s = 0.1
    return {
        "embed_tokens":    s * jax.random.normal(ks[0], (VOCAB, HIDDEN), jnp.float32),
        "embed_positions": s * jax.random.normal(ks[1], (MAX_POS, HIDDEN), jnp.float32),
        "wq":   s * jax.random.normal(ks[2], (HIDDEN, HIDDEN), jnp.float32),
        "wk":   s * jax.random.normal(ks[3], (HIDDEN, HIDDEN), jnp.float32),
        "wv":   s * jax.random.normal(ks[4], (HIDDEN, HIDDEN), jnp.float32),
        "wo":   s * jax.random.normal(ks[5], (HIDDEN, HIDDEN), jnp.float32),
        "wprm": s * jax.random.normal(ks[6], (HIDDEN, HIDDEN), jnp.float32),
        "bprm": s * jax.random.normal(ks[7], (1, HIDDEN), jnp.float32),
        "w1":   s * jax.random.normal(ks[8], (HIDDEN, INTERMEDIATE), jnp.float32),
        "b1":   s * jax.random.normal(ks[9], (1, INTERMEDIATE), jnp.float32),
        "w2":   s * jax.random.normal(ks[10], (INTERMEDIATE, HIDDEN), jnp.float32),
        "b2":   s * jax.random.normal(ks[11], (1, HIDDEN), jnp.float32),
    }


def rope_tables_full(positions):
    """positions: (B, S) -> cos/sin tables tiled to full hidden width (B, S, HIDDEN), f32."""
    inv_freq = 1.0 / (10000.0 ** (jnp.arange(0, HEAD_DIM, 2, dtype=jnp.float32) / HEAD_DIM))
    freqs = positions.astype(jnp.float32)[..., None] * inv_freq          # (B, S, hd/2)
    cos = jnp.concatenate([jnp.cos(freqs), jnp.cos(freqs)], axis=-1)     # (B, S, hd)
    sin = jnp.concatenate([jnp.sin(freqs), jnp.sin(freqs)], axis=-1)
    return jnp.tile(cos, (1, 1, NUM_HEADS)), jnp.tile(sin, (1, 1, NUM_HEADS))


@jax.jit
def forward(input_ids, positions, params):
    B, S = input_ids.shape
    NH, HD, H = NUM_HEADS, HEAD_DIM, HIDDEN
    ROWS = B * NH * S                                   # (b, h, s)-stacked sublane rows

    # glue: embedding gathers + RoPE tables + all weight fusions in plain JAX (outside the kernel)
    emb = params["embed_tokens"][input_ids] + params["embed_positions"][positions]   # (B,S,H) f32
    cos_full, sin_full = rope_tables_full(positions)                                  # (B,S,H) f32

    # Fused QKV (+ rotate_half) weight, softmax scale folded into the q columns.
    scale = 1.0 / np.sqrt(HD)
    wq_s = params["wq"] * scale
    w_qkv = jnp.concatenate([wq_s, params["wk"], params["wv"],
                             wq_s @ ROT_HALF, params["wk"] @ ROT_HALF], axis=1)       # (H, 5H)

    # Collapsed tail with wo folded in (no activation anywhere between wo and the final add).
    w_tail = params["wo"] @ (params["wprm"] + params["w1"] @ params["w2"])            # (H, H)
    b_tail = params["bprm"] + params["b1"] @ params["w2"] + params["b2"]              # (1, H)

    # (b, h, s)-stacked activations and head-masked RoPE tables (row r = b*NH*S + h*S + s).
    x_rep   = jnp.broadcast_to(emb[:, None],      (B, NH, S, H)).reshape(ROWS, H)
    cos_rep = jnp.broadcast_to(cos_full[:, None], (B, NH, S, H)).reshape(ROWS, H)
    sin_rep = jnp.broadcast_to(sin_full[:, None], (B, NH, S, H)).reshape(ROWS, H)

    r = jnp.arange(ROWS)
    b_idx = r // (NH * S)
    h_idx = (r // S) % NH
    s_idx = r % S
    col_head = jnp.arange(H) // HD
    vmask = (h_idx[:, None] == col_head[None, :]).astype(jnp.float32)                 # (ROWS, H)
    cosm = cos_rep * vmask
    sinm = sin_rep * vmask

    # Block-diagonal causal mask as an additive bias (hoisted out of the kernel).
    same_blk = (b_idx[:, None] == b_idx[None, :]) & (h_idx[:, None] == h_idx[None, :])
    causal = s_idx[None, :] <= s_idx[:, None]
    bias_full = jnp.where(same_blk & causal, 0.0, -1e30).astype(jnp.float32)          # (ROWS, ROWS)

    RB = ROWS // GRID_STEPS                              # rows per grid step
    OUT_BLK = (B * S) // GRID_STEPS                      # output rows per grid step
    bias_blocks = jnp.stack([bias_full[i * RB:(i + 1) * RB, i * RB:(i + 1) * RB]
                             for i in range(GRID_STEPS)])                             # (G, RB, RB)

    out = pl.pallas_call(
        fused_prm_kernel,
        out_shape=jax.ShapeDtypeStruct((B * S, H), jnp.float32),
        grid=(GRID_STEPS,),
        in_specs=[
            pl.BlockSpec((RB, H), lambda i: (i, 0)),                 # x_rep   (streamed)
            pl.BlockSpec((RB, H), lambda i: (i, 0)),                 # cosm    (head-masked cos)
            pl.BlockSpec((RB, H), lambda i: (i, 0)),                 # sinm    (head-masked sin)
            pl.BlockSpec((RB, H), lambda i: (i, 0)),                 # vmask   (head column mask)
            pl.BlockSpec((None, RB, RB), lambda i: (i, 0, 0)),       # causal block-diag bias
            pl.BlockSpec((H, 5 * H), lambda i: (0, 0)),              # fused QKV weight (resident)
            pl.BlockSpec((H, H), lambda i: (0, 0)),                  # fused tail weight (resident)
            pl.BlockSpec((1, H), lambda i: (0, 0)),                  # fused tail bias (resident)
        ],
        out_specs=pl.BlockSpec((OUT_BLK, H), lambda i: (i, 0)),
        compiler_params=pltpu.CompilerParams(
            dimension_semantics=("parallel",),           # v7x: with GRID_STEPS=2, shards across TCs
            vmem_limit_bytes=32 * 1024 * 1024,
        ),
    )(x_rep.astype(jnp.bfloat16), cosm, sinm, vmask, bias_blocks,
      w_qkv.astype(jnp.bfloat16), w_tail.astype(jnp.bfloat16), b_tail)

    return out.reshape(B, S, H)


# ------------------------- pure-JAX f32 reference (module semantics) -------------------------
def _reference_single(ids, pos, params):
    emb = params["embed_tokens"][ids] + params["embed_positions"][pos]   # (S, H)
    inv_freq = 1.0 / (10000.0 ** (jnp.arange(0, HEAD_DIM, 2, dtype=jnp.float32) / HEAD_DIM))
    freqs = pos.astype(jnp.float32)[:, None] * inv_freq[None, :]
    cos = jnp.concatenate([jnp.cos(freqs), jnp.cos(freqs)], axis=-1)     # (S, hd)
    sin = jnp.concatenate([jnp.sin(freqs), jnp.sin(freqs)], axis=-1)

    q = emb @ params["wq"]
    k = emb @ params["wk"]
    v = emb @ params["wv"]
    S = emb.shape[0]
    half = HEAD_DIM // 2

    def rot(t):
        return jnp.concatenate([-t[:, half:], t[:, :half]], axis=-1)

    causal = jnp.arange(S)[None, :] <= jnp.arange(S)[:, None]
    attn_out = jnp.zeros((S, HIDDEN), jnp.float32)
    for h in range(NUM_HEADS):
        lo = h * HEAD_DIM
        qh = q[:, lo:lo + HEAD_DIM] * cos + rot(q[:, lo:lo + HEAD_DIM]) * sin
        kh = k[:, lo:lo + HEAD_DIM] * cos + rot(k[:, lo:lo + HEAD_DIM]) * sin
        vh = v[:, lo:lo + HEAD_DIM]
        s = (qh @ kh.T) / jnp.sqrt(jnp.float32(HEAD_DIM))
        s = jnp.where(causal, s, -1e30)
        p = jax.nn.softmax(s, axis=-1)
        attn_out = attn_out + (p @ vh) @ params["wo"][lo:lo + HEAD_DIM, :]

    prm = attn_out @ params["wprm"] + params["bprm"]
    ffn = (attn_out @ params["w1"] + params["b1"]) @ params["w2"] + params["b2"]
    return ffn + prm


def forward_reference(input_ids, positions, params):
    return jnp.stack([_reference_single(input_ids[b], positions[b], params)
                      for b in range(input_ids.shape[0])])


if __name__ == "__main__":
    key = jax.random.PRNGKey(0)
    k_param, k_ids = jax.random.split(key)
    params = build_params(k_param)
    input_ids = jax.random.randint(k_ids, (BATCH, SEQ), 0, VOCAB, dtype=jnp.int32)
    positions = jnp.tile(jnp.arange(SEQ, dtype=jnp.int32)[None, :], (BATCH, 1))

    out = forward(input_ids, positions, params)
    jax.block_until_ready(out)

    ref = forward_reference(input_ids, positions, params)
    assert out.shape == (BATCH, SEQ, HIDDEN)

    # bf16 matmuls + approx reciprocal + tail/wo fold change rounding order vs the f32 reference;
    # tolerance tightened vs previous revision (review correctness note).
    err = float(jnp.max(jnp.abs(out - ref)))
    tol = 0.02 * float(jnp.max(jnp.abs(ref))) + 1e-4
    assert err <= tol, f"mismatch vs JAX reference: max_abs_err={err} > tol={tol}"

    print("KERNEL_OK")
</pallas_src>

<mosaic_0001>
module attributes {stable_mosaic.version = 11 : i64} {
  func.func @fused_prm_kernel(%arg0: i32, %arg1: memref<128x32xbf16, #tpu.memory_space<vmem>>, %arg2: memref<128x32xf32, #tpu.memory_space<vmem>>, %arg3: memref<128x32xf32, #tpu.memory_space<vmem>>, %arg4: memref<128x32xf32, #tpu.memory_space<vmem>>, %arg5: memref<1x128x128xf32, #tpu.memory_space<vmem>>, %arg6: memref<32x160xbf16, #tpu.memory_space<vmem>>, %arg7: memref<32x32xbf16, #tpu.memory_space<vmem>>, %arg8: memref<1x32xf32, #tpu.memory_space<vmem>>, %arg9: memref<32x32xf32, #tpu.memory_space<vmem>>) attributes {dimension_semantics = [#tpu.dimension_semantics<parallel>], iteration_bounds = array<i64: 1>, scalar_prefetch = 0 : i64, scratch_operands = 0 : i64, tpu.core_type = #tpu.core_type<tc>, window_params = [{transform_indices = @transform_0, window_bounds = array<i64: 128, 32>}, {transform_indices = @transform_1, window_bounds = array<i64: 128, 32>}, {transform_indices = @transform_2, window_bounds = array<i64: 128, 32>}, {transform_indices = @transform_3, window_bounds = array<i64: 128, 32>}, {transform_indices = @transform_4, window_bounds = array<i64: 1, 128, 128>}, {pipeline_mode = #tpu.pipeline_mode<synchronous>, transform_indices = @transform_5, window_bounds = array<i64: 32, 160>}, {pipeline_mode = #tpu.pipeline_mode<synchronous>, transform_indices = @transform_6, window_bounds = array<i64: 32, 32>}, {pipeline_mode = #tpu.pipeline_mode<synchronous>, transform_indices = @transform_7, window_bounds = array<i64: 1, 32>}, {transform_indices = @transform_8, window_bounds = array<i64: 32, 32>}]} {
    %c0 = arith.constant 0 : index
    %c0_0 = arith.constant 0 : index
    %0 = vector.load %arg1[%c0, %c0_0] : memref<128x32xbf16, #tpu.memory_space<vmem>>, vector<128x32xbf16>
    %c0_1 = arith.constant 0 : index
    %c0_2 = arith.constant 0 : index
    %1 = vector.load %arg6[%c0_1, %c0_2] : memref<32x160xbf16, #tpu.memory_space<vmem>>, vector<32x160xbf16>
    %cst = arith.constant dense<0.000000e+00> : vector<128x160xf32>
    %2 = tpu.matmul %0, %1, %cst {dimension_numbers = #tpu.dot_dimension_numbers<[1], [0], [0], [1], [0, 0, 1, 1], [], []>} : vector<128x32xbf16>, vector<32x160xbf16>, vector<128x160xf32> -> vector<128x160xf32>
    %c0_3 = arith.constant 0 : index
    %c0_4 = arith.constant 0 : index
    %3 = vector.load %arg2[%c0_3, %c0_4] : memref<128x32xf32, #tpu.memory_space<vmem>>, vector<128x32xf32>
    %c0_5 = arith.constant 0 : index
    %c0_6 = arith.constant 0 : index
    %4 = vector.load %arg3[%c0_5, %c0_6] : memref<128x32xf32, #tpu.memory_space<vmem>>, vector<128x32xf32>
    %5 = vector.extract_strided_slice %2 {offsets = [0, 0], sizes = [128, 32], strides = [1, 1]} : vector<128x160xf32> to vector<128x32xf32>
    %6 = arith.mulf %5, %3 : vector<128x32xf32>
    %7 = vector.extract_strided_slice %2 {offsets = [0, 96], sizes = [128, 32], strides = [1, 1]} : vector<128x160xf32> to vector<128x32xf32>
    %8 = arith.mulf %7, %4 : vector<128x32xf32>
    %9 = arith.addf %6, %8 : vector<128x32xf32>
    %10 = vector.extract_strided_slice %2 {offsets = [0, 32], sizes = [128, 32], strides = [1, 1]} : vector<128x160xf32> to vector<128x32xf32>
    %11 = arith.mulf %10, %3 : vector<128x32xf32>
    %12 = vector.extract_strided_slice %2 {offsets = [0, 128], sizes = [128, 32], strides = [1, 1]} : vector<128x160xf32> to vector<128x32xf32>
    %13 = arith.mulf %12, %4 : vector<128x32xf32>
    %14 = arith.addf %11, %13 : vector<128x32xf32>
    %15 = vector.extract_strided_slice %2 {offsets = [0, 64], sizes = [128, 32], strides = [1, 1]} : vector<128x160xf32> to vector<128x32xf32>
    %c0_7 = arith.constant 0 : index
    %c0_8 = arith.constant 0 : index
    %16 = vector.load %arg4[%c0_7, %c0_8] : memref<128x32xf32, #tpu.memory_space<vmem>>, vector<128x32xf32>
    %17 = arith.mulf %15, %16 : vector<128x32xf32>
    %18 = arith.truncf %9 : vector<128x32xf32> to vector<128x32xbf16>
    %19 = arith.truncf %14 : vector<128x32xf32> to vector<128x32xbf16>
    %cst_9 = arith.constant dense<0.000000e+00> : vector<128x128xf32>
    %20 = tpu.matmul %18, %19, %cst_9 {dimension_numbers = #tpu.dot_dimension_numbers<[1], [1], [0], [0], [0, 0, 1, 0], [], []>} : vector<128x32xbf16>, vector<128x32xbf16>, vector<128x128xf32> -> vector<128x128xf32>
    %c0_10 = arith.constant 0 : index
    %c0_11 = arith.constant 0 : index
    %c0_12 = arith.constant 0 : index
    %21 = vector.load %arg5[%c0_10, %c0_11, %c0_12] : memref<1x128x128xf32, #tpu.memory_space<vmem>>, vector<1x128x128xf32>
    %22 = vector.shape_cast %21 : vector<1x128x128xf32> to vector<128x128xf32>
    %23 = arith.addf %20, %22 : vector<128x128xf32>
    %cst_13 = arith.constant dense<0xFF800000> : vector<128xf32>
    %24 = vector.multi_reduction <maximumf>, %23, %cst_13 [1] : vector<128x128xf32> to vector<128xf32>
    %25 = vector.shape_cast %24 : vector<128xf32> to vector<128x1xf32>
    %26 = vector.broadcast %25 : vector<128x1xf32> to vector<128x128xf32>
    %27 = arith.subf %23, %26 : vector<128x128xf32>
    %28 = math.exp %27 : vector<128x128xf32>
    %cst_14 = arith.constant dense<0.000000e+00> : vector<128xf32>
    %29 = vector.multi_reduction <add>, %28, %cst_14 [1] : vector<128x128xf32> to vector<128xf32>
    %30 = vector.shape_cast %29 : vector<128xf32> to vector<128x1xf32>
    %31 = tpu.reciprocal %30 {approx = true} : vector<128x1xf32> -> vector<128x1xf32>
    %32 = vector.broadcast %31 : vector<128x1xf32> to vector<128x128xf32>
    %33 = arith.mulf %28, %32 : vector<128x128xf32>
    %34 = arith.truncf %33 : vector<128x128xf32> to vector<128x128xbf16>
    %35 = arith.truncf %17 : vector<128x32xf32> to vector<128x32xbf16>
    %cst_15 = arith.constant dense<0.000000e+00> : vector<128x32xf32>
    %36 = tpu.matmul %34, %35, %cst_15 {dimension_numbers = #tpu.dot_dimension_numbers<[1], [0], [0], [1], [0, 0, 1, 1], [], []>} : vector<128x128xbf16>, vector<128x32xbf16>, vector<128x32xf32> -> vector<128x32xf32>
    %37 = vector.extract_strided_slice %36 {offsets = [0, 0], sizes = [8, 32], strides = [1, 1]} : vector<128x32xf32> to vector<8x32xf32>
    %38 = vector.extract_strided_slice %36 {offsets = [8, 0], sizes = [8, 32], strides = [1, 1]} : vector<128x32xf32> to vector<8x32xf32>
    %39 = arith.addf %37, %38 : vector<8x32xf32>
    %40 = vector.extract_strided_slice %36 {offsets = [16, 0], sizes = [8, 32], strides = [1, 1]} : vector<128x32xf32> to vector<8x32xf32>
    %41 = arith.addf %39, %40 : vector<8x32xf32>
    %42 = vector.extract_strided_slice %36 {offsets = [24, 0], sizes = [8, 32], strides = [1, 1]} : vector<128x32xf32> to vector<8x32xf32>
    %43 = arith.addf %41, %42 : vector<8x32xf32>
    %44 = vector.extract_strided_slice %36 {offsets = [32, 0], sizes = [8, 32], strides = [1, 1]} : vector<128x32xf32> to vector<8x32xf32>
    %45 = vector.extract_strided_slice %36 {offsets = [40, 0], sizes = [8, 32], strides = [1, 1]} : vector<128x32xf32> to vector<8x32xf32>
    %46 = arith.addf %44, %45 : vector<8x32xf32>
    %47 = vector.extract_strided_slice %36 {offsets = [48, 0], sizes = [8, 32], strides = [1, 1]} : vector<128x32xf32> to vector<8x32xf32>
    %48 = arith.addf %46, %47 : vector<8x32xf32>
    %49 = vector.extract_strided_slice %36 {offsets = [56, 0], sizes = [8, 32], strides = [1, 1]} : vector<128x32xf32> to vector<8x32xf32>
    %50 = arith.addf %48, %49 : vector<8x32xf32>
    %51 = vector.extract_strided_slice %36 {offsets = [64, 0], sizes = [8, 32], strides = [1, 1]} : vector<128x32xf32> to vector<8x32xf32>
    %52 = vector.extract_strided_slice %36 {offsets = [72, 0], sizes = [8, 32], strides = [1, 1]} : vector<128x32xf32> to vector<8x32xf32>
    %53 = arith.addf %51, %52 : vector<8x32xf32>
    %54 = vector.extract_strided_slice %36 {offsets = [80, 0], sizes = [8, 32], strides = [1, 1]} : vector<128x32xf32> to vector<8x32xf32>
    %55 = arith.addf %53, %54 : vector<8x32xf32>
    %56 = vector.extract_strided_slice %36 {offsets = [88, 0], sizes = [8, 32], strides = [1, 1]} : vector<128x32xf32> to vector<8x32xf32>
    %57 = arith.addf %55, %56 : vector<8x32xf32>
    %58 = vector.extract_strided_slice %36 {offsets = [96, 0], sizes = [8, 32], strides = [1, 1]} : vector<128x32xf32> to vector<8x32xf32>
    %59 = vector.extract_strided_slice %36 {offsets = [104, 0], sizes = [8, 32], strides = [1, 1]} : vector<128x32xf32> to vector<8x32xf32>
    %60 = arith.addf %58, %59 : vector<8x32xf32>
    %61 = vector.extract_strided_slice %36 {offsets = [112, 0], sizes = [8, 32], strides = [1, 1]} : vector<128x32xf32> to vector<8x32xf32>
    %62 = arith.addf %60, %61 : vector<8x32xf32>
    %63 = vector.extract_strided_slice %36 {offsets = [120, 0], sizes = [8, 32], strides = [1, 1]} : vector<128x32xf32> to vector<8x32xf32>
    %64 = arith.addf %62, %63 : vector<8x32xf32>
    %65 = tpu.concatenate %43, %50, %57, %64 in 0 : vector<8x32xf32>, vector<8x32xf32>, vector<8x32xf32>, vector<8x32xf32> -> vector<32x32xf32>
    %66 = arith.truncf %65 : vector<32x32xf32> to vector<32x32xbf16>
    %c0_16 = arith.constant 0 : index
    %c0_17 = arith.constant 0 : index
    %67 = vector.load %arg7[%c0_16, %c0_17] : memref<32x32xbf16, #tpu.memory_space<vmem>>, vector<32x32xbf16>
    %cst_18 = arith.constant dense<0.000000e+00> : vector<32x32xf32>
    %68 = tpu.matmul %66, %67, %cst_18 {dimension_numbers = #tpu.dot_dimension_numbers<[1], [0], [0], [1], [0, 0, 1, 1], [], []>} : vector<32x32xbf16>, vector<32x32xbf16>, vector<32x32xf32> -> vector<32x32xf32>
    %c0_19 = arith.constant 0 : index
    %c0_20 = arith.constant 0 : index
    %69 = vector.load %arg8[%c0_19, %c0_20] : memref<1x32xf32, #tpu.memory_space<vmem>>, vector<1x32xf32>
    %70 = vector.broadcast %69 : vector<1x32xf32> to vector<32x32xf32>
    %71 = arith.addf %68, %70 : vector<32x32xf32>
    %c0_21 = arith.constant 0 : index
    %c0_22 = arith.constant 0 : index
    %72 = vector.load %arg9[%c0_21, %c0_22] : memref<32x32xf32, #tpu.memory_space<vmem>>, vector<32x32xf32>
    tpu.vector_store %arg9[%c0_21, %c0_22], %71 {strides = array<i32>} : memref<32x32xf32, #tpu.memory_space<vmem>>, vector<32x32xf32>,
    return
  }
  func.func @transform_0(%arg0: i32) -> (i32, i32) {
    %c0_i32 = arith.constant 0 : i32
    %c0_i32_0 = arith.constant 0 : i32
    return %arg0, %c0_i32 : i32, i32
  }
  func.func @transform_1(%arg0: i32) -> (i32, i32) {
    %c0_i32 = arith.constant 0 : i32
    %c0_i32_0 = arith.constant 0 : i32
    return %arg0, %c0_i32 : i32, i32
  }
  func.func @transform_2(%arg0: i32) -> (i32, i32) {
    %c0_i32 = arith.constant 0 : i32
    %c0_i32_0 = arith.constant 0 : i32
    return %arg0, %c0_i32 : i32, i32
  }
  func.func @transform_3(%arg0: i32) -> (i32, i32) {
    %c0_i32 = arith.constant 0 : i32
    %c0_i32_0 = arith.constant 0 : i32
    return %arg0, %c0_i32 : i32, i32
  }
  func.func @transform_4(%arg0: i32) -> (i32, i32, i32) {
    %c0_i32 = arith.constant 0 : i32
    %c0_i32_0 = arith.constant 0 : i32
    %c0_i32_1 = arith.constant 0 : i32
    return %arg0, %c0_i32, %c0_i32_0 : i32, i32, i32
  }
  func.func @transform_5(%arg0: i32) -> (i32, i32) {
    %c0_i32 = arith.constant 0 : i32
    %c0_i32_0 = arith.constant 0 : i32
    %c0_i32_1 = arith.constant 0 : i32
    return %c0_i32, %c0_i32_0 : i32, i32
  }
  func.func @transform_6(%arg0: i32) -> (i32, i32) {
    %c0_i32 = arith.constant 0 : i32
    %c0_i32_0 = arith.constant 0 : i32
    %c0_i32_1 = arith.constant 0 : i32
    return %c0_i32, %c0_i32_0 : i32, i32
  }
  func.func @transform_7(%arg0: i32) -> (i32, i32) {
    %c0_i32 = arith.constant 0 : i32
    %c0_i32_0 = arith.constant 0 : i32
    %c0_i32_1 = arith.constant 0 : i32
    return %c0_i32, %c0_i32_0 : i32, i32
  }
  func.func @transform_8(%arg0: i32) -> (i32, i32) {
    %c0_i32 = arith.constant 0 : i32
    %c0_i32_0 = arith.constant 0 : i32
    return %arg0, %c0_i32 : i32, i32
  }
}

</mosaic_0001>

<bundles_post_ra>
// kernel: forward.1
= control target key start
LH: loop header
LB: loop body
LE: loop exit
PB: predicated region body
PF: predicated region fallthrough
CT: control target
= control target key end

     0   :  { %v1589_v2 = vmov 0   ;;  %vm111_vm0 = vcmask 261120   ;;  %s1590_s17 = smov 32   ;;  %s2375_s0 = inlined_call_operand.vmem [shape: bf16[128,32], index: 0, kind: input, shape index: {}]   ;;  %s2376_s1 = inlined_call_operand.vmem [shape: f32[128,32], index: 1, kind: input, shape index: {}]   ;;  %s2377_s2 = inlined_call_operand.vmem [shape: f32[128,32], index: 2, kind: input, shape index: {}]   ;;  %s2378_s3 = inlined_call_operand.vmem [shape: f32[128,32], index: 3, kind: input, shape index: {}]   ;;  %s2379_s4 = inlined_call_operand.vmem [shape: f32[1,128,128], index: 4, kind: input, shape index: {}]   ;;  %s2380_s5 = inlined_call_operand.vmem [shape: bf16[32,160], index: 5, kind: input, shape index: {}]   ;;  %s2381_s6 = inlined_call_operand.vmem [shape: bf16[32,32], index: 6, kind: input, shape index: {}]   ;;  %s2382_s7 = inlined_call_operand.vmem [shape: f32[1,32], index: 7, kind: input, shape index: {}]   ;;  %s2383_s8 = inlined_call_operand.hbm [shape: f32[32,32], index: 8, kind: output, shape index: {}]  }
   0x1   :  { %v1487_v0 = vld [vmem:[%s2380_s5 + $0x14] ss:$8 sps:$4 sm:$0xff]   ;;  %v1489_v1 = vld [vmem:[%s2380_s5 + $0x10] ss:$8 sps:$4 sm:$0xff]   ;;  %168 = vmatprep.mubr.bf16.mxu0 %v1589_v2  ;;  %v1490_v3 = vld [vmem:[%s2380_s5 + $0x4] ss:$8 sps:$4 sm:$0xff]  }
   0x2   :  { %148 = vmatprep.subr.bf16.mxu0 %v1487_v0  ;;  %v1492_v4 = vld [vmem:[%s2380_s5] ss:$8 sps:$4 sm:$0xff]   ;;  %v1660_v6 = vld [vmem:[%s2376_s1 + $0x70] sm:$0xff]  ;;  %v1667_v7 = vld [vmem:[%s2376_s1 + $0x78] sm:$0xff] }
   0x3   :  { %149 = vmatpush1.bf16.msra.mxu0 %v1489_v1  ;;  %v1493_v5 = vld [vmem:[%s2375_s0] sm:$0xff]   ;;  %501 = vrot.lane.b32.xlu0 %v1660_v6, %s1590_s17  ;;  %v1672_v8 = vld [vmem:[%s2376_s1 + $0x68] sm:$0xff] }
   0x4   :  { %150 = vmatprep.subr.bf16.mxu0 %v1490_v3  ;;  %499 = vrot.lane.b32.xlu1 %v1672_v8, %s1590_s17 }
   0x7   :  { %151 = vmatpush1.bf16.msra.mxu0 %v1492_v4 }
   0xa   :  { %1343 = vmatmul.mubr.msk.bf16.vlgmr.msra.gmra.mxu0 %vm111_vm0, %v1493_v5 }
   0xb   :  { %178 = vmatprep.mubr.bf16.mxu0 %v1589_v2 }
   0xc   :  { %13 = vsyncpa [#allocation3], 0  ;;  %v1494_v9 = vld [vmem:[%s2375_s0 + $0x8] sm:$0xff]   ;;  %503 = vrot.lane.b32.xlu0 %v1667_v7, %s1590_s17  ;;  %v1684_v10 = vld [vmem:[%s2376_s1 + $0x60] sm:$0xff]  ;;  %s1591_s20 = smov 96   ;;  %s1592_s25 = smov 64  }
   0xd   :  { %v1692_v11 = vld [vmem:[%s2376_s1 + $0x50] sm:$0xff]  ;;  %v1496_v13 = vld [vmem:[%s2375_s0 + $0x18] sm:$0xff]   ;;  %v1497_v14 = vld [vmem:[%s2375_s0 + $0x20] sm:$0xff]   ;;  %s1593_s16 = smov [#allocation2]  }
   0xe   :  { %v1495_v12 = vld [vmem:[%s2375_s0 + $0x10] sm:$0xff]   ;;  %v1498_v15 = vld [vmem:[%s2375_s0 + $0x28] sm:$0xff]   ;;  %v1500_v17 = vld [vmem:[%s2375_s0 + $0x38] sm:$0xff]  }
   0xf   :  { %v1499_v16 = vld [vmem:[%s2375_s0 + $0x30] sm:$0xff]   ;;  %v1761_v43 = vld [vmem:[%s2377_s2 + $0x60] sm:$0xff]  ;;  %v1774_v48 = vld [vmem:[%s2377_s2 + $0x68] sm:$0xff]  ;;  %s1320_s0 = sshll.u32 %s1593_s16, 4  ;;  %s1321_s0 = int_to_ptr.vmem [resolvable:$true] %s1320_s0 }
  0x10   :  { %497 = vrot.lane.b32.xlu0 %v1684_v10, %s1590_s17  ;;  %v1767_v46 = vld [vmem:[%s2377_s2 + $0x50] sm:$0xff]  ;;  %v1792_v56 = vld [vmem:[%s2377_s2 + $0x40] sm:$0xff]  ;;  %v1804_v59 = vld [vmem:[%s2377_s2 + $0x78] sm:$0xff]  ;;  %p1572_p1 = scmp.lt.s32.totalorder %s1321_s0, %s1321_s0 }
  0x11   :  { %v1784_v53 = vld [vmem:[%s2377_s2 + $0x70] sm:$0xff]  ;;  %v1799_v58 = vld [vmem:[%s2376_s1 + $0x40] sm:$0xff]  ;;  %v1824_v1 = vld [vmem:[%s2377_s2 + $0x58] sm:$0xff] }
  0x12   :  { %1344 = vmatmul.mubr.msk.bf16.gmra.mxu0 %vm111_vm0, %v1494_v9  ;;  %v1816_v63 = vld [vmem:[%s2376_s1 + $0x30] sm:$0xff]  ;;  %v1841_v5 = vld [vmem:[%s2376_s1 + $0x20] sm:$0xff] }
  0x13   :  { %188 = vmatprep.mubr.bf16.mxu0 %v1589_v2  ;;  %v271_v0 = vld [vmem:[%s2377_s2 + $0x30] sm:$0xff]  ;;  %v269_v9 = vld [vmem:[%s2377_s2 + $0x20] sm:$0xff] }
  0x14   :  { %493 = vrot.lane.b32.xlu0 %v1692_v11, %s1590_s17 }
  0x1a   :  { %1345 = vmatmul.mubr.msk.bf16.gmra.mxu0 %vm111_vm0, %v1495_v12  ;;  %v1849_v12 = vld [vmem:[%s2377_s2 + $0x48] sm:$0xff] }
  0x1b   :  { %198 = vmatprep.mubr.bf16.mxu0 %v1589_v2 }
  0x22   :  { %1346 = vmatmul.mubr.msk.bf16.gmra.mxu0 %vm111_vm0, %v1496_v13  ;;  %v1854_v13 = vld [vmem:[%s2376_s1 + $0x48] sm:$0xff] }
  0x23   :  { %208 = vmatprep.mubr.bf16.mxu0 %v1589_v2 }
  0x2a   :  { %1347 = vmatmul.mubr.msk.bf16.gmra.mxu0 %vm111_vm0, %v1497_v14 }
  0x2b   :  { %218 = vmatprep.mubr.bf16.mxu0 %v1589_v2 }
  0x32   :  { %1348 = vmatmul.mubr.msk.bf16.gmra.mxu0 %vm111_vm0, %v1498_v15 }
  0x33   :  { %228 = vmatprep.mubr.bf16.mxu0 %v1589_v2 }
  0x3a   :  { %1349 = vmatmul.mubr.msk.bf16.gmra.mxu0 %vm111_vm0, %v1499_v16  ;;  %v1866_v16 = vld [vmem:[%s2376_s1 + $0x10] sm:$0xff] }
  0x3b   :  { %238 = vmatprep.mubr.bf16.mxu0 %v1589_v2  ;;  %v1829_v2 = vld [vmem:[%s2376_s1 + $0x58] sm:$0xff] }
  0x42   :  { %1350 = vmatmul.mubr.msk.bf16.gmra.mxu0 %vm111_vm0, %v1500_v17  ;;  %v267_v17 = vld [vmem:[%s2377_s2 + $0x10] sm:$0xff] }
  0xca   :  { %v1720_v18 = vpop.f32.mrf.mxu0 }
  0xcc   :  { %v1722_v19 = vpop.f32.mrf.mxu0 }
  0xce   :  { %v1724_v20 = vpop.f32.mrf.mxu0 }
  0xd0   :  { %v1726_v21 = vpop.f32.mrf.mxu0 }
  0xd2   :  { %v1728_v22 = vpop.f32.mrf.mxu0 }
  0xd4   :  { %v1730_v23 = vpop.f32.mrf.mxu0 }
  0xd6   :  { %v1732_v24 = vpop.f32.mrf.mxu0 }
  0xd8   :  { %v1734_v25 = vpop.f32.mrf.mxu0 }
  0xda   :  { %v1736_v26 = vpop.f32.mrf.mxu0 }
  0xdc   :  { %v192_v27 = vpop.f32.mrf.mxu0 }
  0xdd   :  { %v541_v14 = vmul.f32 %v269_v9, %v192_v27  ;;  %v1879_v27 = vld [vmem:[%s2376_s1 + $0x38] sm:$0xff] }
  0xde   :  { %v1738_v28 = vpop.f32.mrf.mxu0 }
  0xe0   :  { %v1740_v29 = vpop.f32.mrf.mxu0 }
  0xe2   :  { %v1742_v30 = vpop.f32.mrf.mxu0 }
  0xe4   :  { %v202_v31 = vpop.f32.mrf.mxu0 }
  0xe5   :  { %v543_v3 = vmul.f32 %v271_v0, %v202_v31  ;;  %v1874_v31 = vld [vmem:[%s2377_s2 + $0x38] sm:$0xff] }
  0xe6   :  { %v1744_v32 = vpop.f32.mrf.mxu0 }
  0xe8   :  { %v1746_v33 = vpop.f32.mrf.mxu0 }
  0xea   :  { %v1748_v34 = vpop.f32.mrf.mxu0 }
  0xec   :  { %v212_v35 = vpop.f32.mrf.mxu0 }
  0xed   :  { %v545_v61 = vmul.f32 %v1792_v56, %v212_v35  ;;  %v539_v35 = vmul.f32 %v267_v17, %v1730_v23  ;;  %v270_v23 = vld [vmem:[%s2377_s2 + $0x28] sm:$0xff] }
  0xee   :  { %v1750_v36 = vpop.f32.mrf.mxu0 }
  0xf0   :  { %v216_v37 = vpop.f32.mrf.mxu0 }
  0xf1   :  { %v546_v15 = vmul.f32 %v1849_v12, %v216_v37  ;;  %v544_v37 = vmul.f32 %v1874_v31, %v1746_v33  ;;  %v1904_v33 = vld [vmem:[%s2376_s1 + $0x28] sm:$0xff] }
  0xf2   :  { %v1752_v38 = vpop.f32.mrf.mxu0 }
  0xf4   :  { %v222_v39 = vpop.f32.mrf.mxu0 }
  0xf5   :  { %v547_v50 = vmul.f32 %v1767_v46, %v222_v39  ;;  %v1893_v39 = vld [vmem:[%s2376_s1] sm:$0xff] }
  0xf6   :  { %v1754_v40 = vpop.f32.mrf.mxu0 }
  0xf8   :  { %v226_v41 = vpop.f32.mrf.mxu0 }
  0xf9   :  { %v548_v4 = vmul.f32 %v1824_v1, %v226_v41  ;;  %v265_v41 = vld [vmem:[%s2377_s2] sm:$0xff] }
  0xfa   :  { %v1756_v42 = vpop.f32.mrf.mxu0 }
  0xfc   :  { %v232_v44 = vpop.f32.mrf.mxu0 }
  0xfd   :  { %v549_v45 = vmul.f32 %v1761_v43, %v232_v44  ;;  %v537_v44 = vmul.f32 %v265_v41, %v1722_v19 }
  0xfe   :  { %v1769_v47 = vpop.f32.mrf.mxu0 }
  0xff   :  { %593 = vrot.lane.b32.xlu0 %v549_v45, %s1590_s17  ;;  %v542_v45 = vmul.f32 %v270_v23, %v1740_v29  ;;  %v266_v29 = vld [vmem:[%s2377_s2 + $0x8] sm:$0xff] }
 0x100   :  { %v236_v49 = vpop.f32.mrf.mxu0 }
 0x101   :  { %v550_v51 = vmul.f32 %v1774_v48, %v236_v49  ;;  %v268_v49 = vld [vmem:[%s2377_s2 + $0x18] sm:$0xff] }
 0x102   :  { %v1779_v52 = vpop.f32.mrf.mxu0  ;;  %v540_v19 = vmul.f32 %v268_v49, %v1734_v25  ;;  %v538_v25 = vmul.f32 %v266_v29, %v1726_v21 }
 0x103   :  { %589 = vrot.lane.b32.xlu0 %v547_v50, %s1590_s17  ;;  %595 = vrot.lane.b32.xlu1 %v550_v51, %s1590_s17  ;;  %v1920_v50 = vld [vmem:[%s2376_s1 + $0x18] sm:$0xff]  ;;  %v1934_v51 = vld [vmem:[%s2376_s1 + $0x8] sm:$0xff] }
 0x104   :  { %v242_v54 = vpop.f32.mrf.mxu0 }
 0x105   :  { %v551_v55 = vmul.f32 %v1784_v53, %v242_v54  ;;  %v502_v54 = vpop.permute.xlu0 %501 }
 0x106   :  { %v1794_v57 = vpop.f32.mrf.mxu0 }
 0x107   :  { %489 = vrot.lane.b32.xlu0 %v1799_v58, %s1590_s17  ;;  %597 = vrot.lane.b32.xlu1 %v551_v55, %s1590_s17 }
 0x108   :  { %v246_v60 = vpop.f32.mrf.mxu0 }
 0x109   :  { %v552_v62 = vmul.f32 %v1804_v59, %v246_v60  ;;  %v504_v55 = vpop.permute.xlu0 %503 }
 0x10b   :  { %585 = vrot.lane.b32.xlu0 %v545_v61, %s1590_s17  ;;  %599 = vrot.lane.b32.xlu1 %v552_v62, %s1590_s17  ;;  %v500_v62 = vpop.permute.xlu1 %499 }
 0x10c   :  { %v534_v21 = vmul.f32 %v500_v62, %v1769_v47 }
 0x10d   :  { %v498_v60 = vpop.permute.xlu0 %497 }
 0x10f   :  { %485 = vrot.lane.b32.xlu0 %v1816_v63, %s1590_s17  ;;  %495 = vrot.lane.b32.xlu1 %v1829_v2, %s1590_s17 }
 0x111   :  { %v494_v61 = vpop.permute.xlu0 %493 }
 0x113   :  { %581 = vrot.lane.b32.xlu0 %v543_v3, %s1590_s17  ;;  %591 = vrot.lane.b32.xlu1 %v548_v4, %s1590_s17  ;;  %v533_v4 = vmul.f32 %v498_v60, %v1756_v42 }
 0x117   :  { %481 = vrot.lane.b32.xlu0 %v1841_v5, %s1590_s17  ;;  %491 = vrot.lane.b32.xlu1 %v1854_v13, %s1590_s17 }
 0x11b   :  { %577 = vrot.lane.b32.xlu0 %v541_v14, %s1590_s17  ;;  %587 = vrot.lane.b32.xlu1 %v546_v15, %s1590_s17 }
 0x11f   :  { %477 = vrot.lane.b32.xlu0 %v1866_v16, %s1590_s17  ;;  %487 = vrot.lane.b32.xlu1 %v1879_v27, %s1590_s17 }
 0x123   :  { %573 = vrot.lane.b32.xlu0 %v539_v35, %s1590_s17  ;;  %583 = vrot.lane.b32.xlu1 %v544_v37, %s1590_s17 }
 0x127   :  { %473 = vrot.lane.b32.xlu0 %v1893_v39, %s1590_s17  ;;  %483 = vrot.lane.b32.xlu1 %v1904_v33, %s1590_s17 }
 0x12b   :  { %569 = vrot.lane.b32.xlu0 %v537_v44, %s1590_s17  ;;  %579 = vrot.lane.b32.xlu1 %v542_v45, %s1590_s17 }
 0x12f   :  { %313 = vrot.lane.b32.xlu0 %v265_v41, %s1591_s20  ;;  %479 = vrot.lane.b32.xlu1 %v1920_v50, %s1590_s17 }
 0x133   :  { %317 = vrot.lane.b32.xlu0 %v267_v17, %s1591_s20  ;;  %575 = vrot.lane.b32.xlu1 %v540_v19, %s1590_s17 }
 0x137   :  { %323 = vrot.lane.b32.xlu0 %v270_v23, %s1591_s20  ;;  %475 = vrot.lane.b32.xlu1 %v1934_v51, %s1590_s17 }
 0x13b   :  { %571 = vrot.lane.b32.xlu1 %v538_v25, %s1590_s17 }
 0x13f   :  { %315 = vrot.lane.b32.xlu1 %v266_v29, %s1591_s20 }
 0x143   :  { %319 = vrot.lane.b32.xlu1 %v268_v49, %s1591_s20 }
 0x147   :  { %321 = vrot.lane.b32.xlu1 %v269_v9, %s1591_s20  ;;  %v536_v9 = vmul.f32 %v504_v55, %v1794_v57 }
 0x14b   :  { %325 = vrot.lane.b32.xlu1 %v271_v0, %s1591_s20  ;;  %v535_v0 = vmul.f32 %v502_v54, %v1779_v52 }
 0x171   :  { %v594_v3 = vpop.permute.xlu0 %593 }
 0x172   :  { %v629_v17 = vadd.f32 %v594_v3, %v533_v4 }
 0x175   :  { %v590_v14 = vpop.permute.xlu0 %589  ;;  %v596_v15 = vpop.permute.xlu1 %595 }
 0x176   :  { %v630_v35 = vadd.f32 %v596_v15, %v534_v21 }
 0x178   :  { %v743_v37 = vpack.c.bf16 %v630_v35, %v629_v17 }
 0x179   :  { %v490_v41 = vpop.permute.xlu0 %489  ;;  %v598_v23 = vpop.permute.xlu1 %597 }
 0x17a   :  { %781 = vrot.lane.b32.xlu1 %v743_v37, %s1591_s20  ;;  %v631_v49 = vadd.f32 %v598_v23, %v535_v0  ;;  %v529_v4 = vmul.f32 %v490_v41, %v1748_v34 }
 0x17d   :  { %v586_v44 = vpop.permute.xlu0 %585  ;;  %v600_v45 = vpop.permute.xlu1 %599 }
 0x17e   :  { %v632_v19 = vadd.f32 %v600_v45, %v536_v9  ;;  %331 = vrot.lane.b32.xlu1 %v1849_v12, %s1591_s20  ;;  %v625_v35 = vadd.f32 %v586_v44, %v529_v4 }
 0x180   :  { %v744_v29 = vpack.c.bf16 %v632_v19, %v631_v49 }
 0x181   :  { %v486_v25 = vpop.permute.xlu0 %485  ;;  %v496_v60 = vpop.permute.xlu1 %495 }
 0x182   :  { %335 = vrot.lane.b32.xlu1 %v1824_v1, %s1591_s20  ;;  %783 = vrot.lane.b32.xlu0 %v744_v29, %s1591_s20  ;;  %v532_v12 = vmul.f32 %v496_v60, %v1754_v40  ;;  %v531_v1 = vmul.f32 %v494_v61, %v1752_v38 }
 0x185   :  { %v582_v62 = vpop.permute.xlu0 %581  ;;  %v592_v3 = vpop.permute.xlu1 %591 }
 0x186   :  { %337 = vrot.lane.b32.xlu1 %v1761_v43, %s1591_s20  ;;  %327 = vrot.lane.b32.xlu0 %v1874_v31, %s1591_s20  ;;  %v628_v21 = vadd.f32 %v592_v3, %v532_v12  ;;  %v627_v31 = vadd.f32 %v590_v14, %v531_v1  ;;  %v527_v14 = vmul.f32 %v486_v25, %v1742_v30 }
 0x188   :  { %v742_v23 = vpack.c.bf16 %v628_v21, %v627_v31 }
 0x189   :  { %v482_v54 = vpop.permute.xlu0 %481  ;;  %v492_v55 = vpop.permute.xlu1 %491 }
 0x18a   :  { %341 = vrot.lane.b32.xlu1 %v1784_v53, %s1591_s20  ;;  %329 = vrot.lane.b32.xlu0 %v1792_v56, %s1591_s20  ;;  %v530_v43 = vmul.f32 %v492_v55, %v1750_v36  ;;  %v525_v19 = vmul.f32 %v482_v54, %v1736_v26 }
 0x18d   :  { %v578_v15 = vpop.permute.xlu0 %577  ;;  %v588_v17 = vpop.permute.xlu1 %587 }
 0x18e   :  { %v626_v37 = vadd.f32 %v588_v17, %v530_v43  ;;  %333 = vrot.lane.b32.xlu0 %v1767_v46, %s1591_s20  ;;  %v623_v46 = vadd.f32 %v582_v62, %v527_v14  ;;  %v621_v55 = vadd.f32 %v578_v15, %v525_v19 }
 0x190   :  { %v741_v53 = vpack.c.bf16 %v626_v37, %v625_v35 }
 0x191   :  { %v478_v0 = vpop.permute.xlu0 %477  ;;  %v488_v9 = vpop.permute.xlu1 %487 }
 0x192   :  { %779 = vrot.lane.b32.xlu0 %v742_v23, %s1591_s20  ;;  %777 = vrot.lane.b32.xlu1 %v741_v53, %s1591_s20  ;;  %v528_v41 = vmul.f32 %v488_v9, %v1744_v32  ;;  %v523_v62 = vmul.f32 %v478_v0, %v1728_v22 }
 0x195   :  { %v574_v56 = vpop.permute.xlu0 %573  ;;  %v584_v61 = vpop.permute.xlu1 %583 }
 0x196   :  { %339 = vrot.lane.b32.xlu0 %v1774_v48, %s1591_s20  ;;  %v624_v44 = vadd.f32 %v584_v61, %v528_v41  ;;  %v619_v21 = vadd.f32 %v574_v56, %v523_v62 }
 0x198   :  { %v740_v29 = vpack.c.bf16 %v624_v44, %v623_v46 }
 0x199   :  { %v484_v45 = vpop.permute.xlu1 %483  ;;  %v474_v49 = vpop.permute.xlu0 %473 }
 0x19a   :  { %343 = vrot.lane.b32.xlu0 %v1804_v59, %s1591_s20  ;;  %v526_v60 = vmul.f32 %v484_v45, %v1738_v28  ;;  %v521_v15 = vmul.f32 %v474_v49, %v1720_v18 }
 0x19d   :  { %v580_v3 = vpop.permute.xlu1 %579  ;;  %v570_v1 = vpop.permute.xlu0 %569 }
 0x19e   :  { %v622_v12 = vadd.f32 %v580_v3, %v526_v60  ;;  %775 = vrot.lane.b32.xlu0 %v740_v29, %s1591_s20  ;;  %v617_v9 = vadd.f32 %v570_v1, %v521_v15 }
 0x1a0   :  { %v739_v48 = vpack.c.bf16 %v622_v12, %v621_v55 }
 0x1a1   :  { %v480_v25 = vpop.permute.xlu1 %479  ;;  %v314_v43 = vpop.permute.xlu0 %313 }
 0x1a2   :  { %773 = vrot.lane.b32.xlu1 %v739_v48, %s1591_s20  ;;  %v524_v59 = vmul.f32 %v480_v25, %v1732_v24  ;;  %v361_v35 = vmul.f32 %v314_v43, %v1720_v18 }
 0x1a5   :  { %v576_v4 = vpop.permute.xlu1 %575  ;;  %v318_v23 = vpop.permute.xlu0 %317 }
 0x1a6   :  { %v620_v54 = vadd.f32 %v576_v4, %v524_v59  ;;  %v363_v56 = vmul.f32 %v318_v23, %v1728_v22 }
 0x1a8   :  { %v738_v17 = vpack.c.bf16 %v620_v54, %v619_v21 }
 0x1a9   :  { %v476_v31 = vpop.permute.xlu1 %475  ;;  %v324_v46 = vpop.permute.xlu0 %323 }
 0x1aa   :  { %771 = vrot.lane.b32.xlu0 %v738_v17, %s1591_s20  ;;  %v522_v37 = vmul.f32 %v476_v31, %v1724_v20  ;;  %v366_v29 = vmul.f32 %v324_v46, %v1738_v28 }
 0x1ad   :  { %v572_v53 = vpop.permute.xlu1 %571 }
 0x1ae   :  { %v618_v0 = vadd.f32 %v572_v53, %v522_v37  ;;  %393 = vrot.lane.b32.xlu0 %v361_v35, %s1590_s17 }
 0x1b0   :  { %v737_v61 = vpack.c.bf16 %v618_v0, %v617_v9 }
 0x1b1   :  { %v316_v41 = vpop.permute.xlu1 %315 }
 0x1b2   :  { %397 = vrot.lane.b32.xlu0 %v363_v56, %s1590_s17  ;;  %769 = vrot.lane.b32.xlu1 %v737_v61, %s1591_s20  ;;  %v362_v14 = vmul.f32 %v316_v41, %v1724_v20 }
 0x1b5   :  { %v320_v44 = vpop.permute.xlu1 %319 }
 0x1b6   :  { %395 = vrot.lane.b32.xlu1 %v362_v14, %s1590_s17  ;;  %v364_v45 = vmul.f32 %v320_v44, %v1732_v24  ;;  %v648_v44 = vld [vmem:[%s2378_s3 + $0x78] sm:$0xff] }
 0x1b9   :  { %v322_v49 = vpop.permute.xlu1 %321 }
 0x1ba   :  { %v365_v19 = vmul.f32 %v322_v49, %v1736_v26  ;;  %399 = vrot.lane.b32.xlu1 %v364_v45, %s1590_s17 }
 0x1bc   :  { %401 = vrot.lane.b32.xlu0 %v365_v19, %s1590_s17  ;;  %v647_v19 = vld [vmem:[%s2378_s3 + $0x70] sm:$0xff] }
 0x1bd   :  { %v326_v60 = vpop.permute.xlu1 %325 }
 0x1be   :  { %v367_v3 = vmul.f32 %v326_v60, %v1742_v30  ;;  %403 = vrot.lane.b32.xlu1 %v366_v29, %s1590_s17  ;;  %v646_v29 = vld [vmem:[%s2378_s3 + $0x68] sm:$0xff]  ;;  %v645_v60 = vld [vmem:[%s2378_s3 + $0x60] sm:$0xff] }
 0x1c0   :  { %405 = vrot.lane.b32.xlu0 %v367_v3, %s1590_s17  ;;  %v641_v3 = vld [vmem:[%s2378_s3 + $0x40] sm:$0xff] }
 0x1ec   :  { %v782_v55 = vpop.permute.xlu1 %781 }
 0x1ed   :  { %v828_v17 = vsel %vm111_vm0, %v782_v55, 0 }
 0x1f0   :  { %v332_v12 = vpop.permute.xlu1 %331 }
 0x1f1   :  { %v370_v54 = vmul.f32 %v332_v12, %v1750_v36 }
 0x1f4   :  { %v784_v48 = vpop.permute.xlu0 %783  ;;  %v336_v25 = vpop.permute.xlu1 %335 }
 0x1f5   :  { %1472 = vmatprep.subr.msk.bf16.mxu1 %vm111_vm0, %v784_v48  ;;  %v831_v1 = vsel %vm111_vm0, %v784_v48, 0  ;;  %v372_v15 = vmul.f32 %v336_v25, %v1754_v40  ;;  %v643_v48 = vld [vmem:[%s2378_s3 + $0x50] sm:$0xff]  ;;  %v644_v25 = vld [vmem:[%s2378_s3 + $0x58] sm:$0xff] }
 0x1f6   :  { %1401 = vmatpush3.bf16.xpose.msra.mxu1 %v831_v1  ;;  %v639_v1 = vld [vmem:[%s2378_s3 + $0x30] sm:$0xff] }
 0x1f7   :  { %1473 = vmatprep.subr.msk.bf16.mxu1 %vm111_vm0, %v782_v55 }
 0x1f8   :  { %v328_v62 = vpop.permute.xlu0 %327  ;;  %v338_v4 = vpop.permute.xlu1 %337 }
 0x1f9   :  { %v368_v59 = vmul.f32 %v328_v62, %v1744_v32  ;;  %v373_v53 = vmul.f32 %v338_v4, %v1756_v42  ;;  %v637_v62 = vld [vmem:[%s2378_s3 + $0x20] sm:$0xff] }
 0x1fb   :  { %407 = vrot.lane.b32.xlu1 %v368_v59, %s1590_s17 }
 0x1fc   :  { %v330_v21 = vpop.permute.xlu0 %329  ;;  %v342_v37 = vpop.permute.xlu1 %341 }
 0x1fd   :  { %v369_v43 = vmul.f32 %v330_v21, %v1748_v34  ;;  %v375_v61 = vmul.f32 %v342_v37, %v1779_v52  ;;  %v642_v21 = vld [vmem:[%s2378_s3 + $0x48] sm:$0xff]  ;;  %v281_v37 = vmul.f32 %v1893_v39, %v1720_v18 }
 0x1fe   :  { %1403 = vmatpush3.bf16.xpose.msra.mxu1 %v828_v17 }
 0x1ff   :  { %409 = vrot.lane.b32.xlu0 %v369_v43, %s1590_s17  ;;  %411 = vrot.lane.b32.xlu1 %v370_v54, %s1590_s17  ;;  %v635_v54 = vld [vmem:[%s2378_s3 + $0x10] sm:$0xff] }
 0x200   :  { %v334_v31 = vpop.permute.xlu0 %333 }
 0x201   :  { %v371_v35 = vmul.f32 %v334_v31, %v1752_v38  ;;  %v640_v31 = vld [vmem:[%s2378_s3 + $0x38] sm:$0xff] }
 0x203   :  { %413 = vrot.lane.b32.xlu0 %v371_v35, %s1590_s17  ;;  %415 = vrot.lane.b32.xlu1 %v372_v15, %s1590_s17  ;;  %v633_v15 = vld [vmem:[%s2378_s3] sm:$0xff] }
 0x204   :  { %v780_v23 = vpop.permute.xlu0 %779  ;;  %v778_v0 = vpop.permute.xlu1 %777 }
 0x205   :  { %1474 = vmatprep.subr.msk.bf16.mxu1 %vm111_vm0, %v780_v23  ;;  %v825_v9 = vsel %vm111_vm0, %v780_v23, 0  ;;  %v822_v46 = vsel %vm111_vm0, %v778_v0, 0  ;;  %v282_v23 = vmul.f32 %v1934_v51, %v1724_v20  ;;  %v284_v51 = vmul.f32 %v1920_v50, %v1732_v24  ;;  %v634_v50 = vld [vmem:[%s2378_s3 + $0x8] sm:$0xff] }
 0x206   :  { %1405 = vmatpush3.bf16.xpose.msra.mxu1 %v825_v9  ;;  %v638_v9 = vld [vmem:[%s2378_s3 + $0x28] sm:$0xff] }
 0x207   :  { %417 = vrot.lane.b32.xlu0 %v373_v53, %s1590_s17  ;;  %1475 = vmatprep.subr.msk.bf16.mxu1 %vm111_vm0, %v778_v0 }
 0x208   :  { %v340_v56 = vpop.permute.xlu0 %339 }
 0x209   :  { %v374_v41 = vmul.f32 %v340_v56, %v1769_v47 }
 0x20b   :  { %419 = vrot.lane.b32.xlu1 %v374_v41, %s1590_s17  ;;  %421 = vrot.lane.b32.xlu0 %v375_v61, %s1590_s17 }
 0x20c   :  { %v344_v14 = vpop.permute.xlu0 %343 }
 0x20d   :  { %v376_v45 = vmul.f32 %v344_v14, %v1794_v57  ;;  %v636_v14 = vld [vmem:[%s2378_s3 + $0x18] sm:$0xff] }
 0x20e   :  { %1407 = vmatpush3.bf16.xpose.msra.mxu1 %v822_v46  ;;  %v283_v46 = vmul.f32 %v1866_v16, %v1728_v22  ;;  %v287_v16 = vmul.f32 %v1816_v63, %v1742_v30 }
 0x20f   :  { %423 = vrot.lane.b32.xlu1 %v376_v45, %s1590_s17  ;;  %695 = vrot.lane.b32.xlu0 %v648_v44, %s1592_s25 }
 0x210   :  { %v776_v49 = vpop.permute.xlu0 %775 }
 0x211   :  { %1476 = vmatprep.subr.msk.bf16.mxu1 %vm111_vm0, %v776_v49  ;;  %v819_v55 = vsel %vm111_vm0, %v776_v49, 0 }
 0x213   :  { %693 = vrot.lane.b32.xlu1 %v647_v19, %s1592_s25  ;;  %691 = vrot.lane.b32.xlu0 %v646_v29, %s1592_s25  ;;  %v285_v19 = vmul.f32 %v1841_v5, %v1736_v26  ;;  %v286_v29 = vmul.f32 %v1904_v33, %v1738_v28  ;;  %v288_v33 = vmul.f32 %v1879_v27, %v1744_v32 }
 0x214   :  { %v774_v12 = vpop.permute.xlu1 %773  ;;  %v291_v27 = vmul.f32 %v1692_v11, %v1752_v38 }
 0x215   :  { %v816_v59 = vsel %vm111_vm0, %v774_v12, 0 }
 0x216   :  { %1409 = vmatpush3.bf16.xpose.msra.mxu1 %v819_v55 }
 0x217   :  { %689 = vrot.lane.b32.xlu1 %v645_v60, %s1592_s25  ;;  %681 = vrot.lane.b32.xlu0 %v641_v3, %s1592_s25 }
 0x218   :  { %1477 = vmatprep.subr.msk.bf16.mxu1 %vm111_vm0, %v774_v12 }
 0x21b   :  { %685 = vrot.lane.b32.xlu1 %v643_v48, %s1592_s25  ;;  %677 = vrot.lane.b32.xlu0 %v639_v1, %s1592_s25 }
 0x21c   :  { %v772_v4 = vpop.permute.xlu0 %771 }
 0x21d   :  { %v813_v35 = vsel %vm111_vm0, %v772_v4, 0 }
 0x21e   :  { %1411 = vmatpush3.bf16.xpose.msra.mxu1 %v816_v59 }
 0x21f   :  { %687 = vrot.lane.b32.xlu1 %v644_v25, %s1592_s25  ;;  %673 = vrot.lane.b32.xlu0 %v637_v62, %s1592_s25 }
 0x220   :  { %1478 = vmatprep.subr.msk.bf16.mxu1 %vm111_vm0, %v772_v4  ;;  %v394_v43 = vpop.permute.xlu0 %393 }
 0x221   :  { %v441_v0 = vadd.f32 %v394_v43, %v281_v37 }
 0x223   :  { %683 = vrot.lane.b32.xlu1 %v642_v21, %s1592_s25  ;;  %669 = vrot.lane.b32.xlu0 %v635_v54, %s1592_s25  ;;  %v289_v21 = vmul.f32 %v1799_v58, %v1748_v34  ;;  %v290_v54 = vmul.f32 %v1854_v13, %v1750_v36 }
 0x224   :  { %v770_v17 = vpop.permute.xlu1 %769  ;;  %v398_v61 = vpop.permute.xlu0 %397 }
 0x225   :  { %v810_v44 = vsel %vm111_vm0, %v770_v17, 0  ;;  %v443_v3 = vadd.f32 %v398_v61, %v283_v46 }
 0x226   :  { %1413 = vmatpush3.bf16.xpose.msra.mxu1 %v813_v35  ;;  %v292_v35 = vmul.f32 %v1829_v2, %v1754_v40 }
 0x227   :  { %679 = vrot.lane.b32.xlu1 %v640_v31, %s1592_s25  ;;  %665 = vrot.lane.b32.xlu0 %v633_v15, %s1592_s25 }
 0x228   :  { %1479 = vmatprep.subr.msk.bf16.mxu1 %vm111_vm0, %v770_v17  ;;  %v396_v53 = vpop.permute.xlu1 %395 }
 0x229   :  { %v442_v56 = vadd.f32 %v396_v53, %v282_v23 }
 0x22b   :  { %675 = vrot.lane.b32.xlu1 %v638_v9, %s1592_s25  ;;  %v729_v39 = vpack.c.bf16 %v442_v56, %v441_v0  ;;  %v293_v0 = vmul.f32 %v1684_v10, %v1756_v42  ;;  %v294_v56 = vmul.f32 %v1672_v8, %v1769_v47 }
 0x22c   :  { %v400_v41 = vpop.permute.xlu1 %399 }
 0x22d   :  { %1416 = vmatprep.mubr.msk.bf16.mxu1 %vm111_vm0, %v729_v39  ;;  %v444_v49 = vadd.f32 %v400_v41, %v284_v51  ;;  %v295_v41 = vmul.f32 %v1660_v6, %v1779_v52  ;;  %v296_v51 = vmul.f32 %v1667_v7, %v1794_v57 }
 0x22e   :  { %v402_v45 = vpop.permute.xlu0 %401  ;;  %1415 = vmatpush3.bf16.xpose.msra.mxu1 %v810_v44 }
 0x22f   :  { %671 = vrot.lane.b32.xlu1 %v636_v14, %s1592_s25  ;;  %v445_v55 = vadd.f32 %v402_v45, %v285_v19  ;;  %v730_v48 = vpack.c.bf16 %v444_v49, %v443_v3 }
 0x230   :  { %v404_v60 = vpop.permute.xlu1 %403 }
 0x231   :  { %v446_v12 = vadd.f32 %v404_v60, %v286_v29 }
 0x232   :  { %v406_v5 = vpop.permute.xlu0 %405 }
 0x233   :  { %v731_v1 = vpack.c.bf16 %v446_v12, %v445_v55  ;;  %667 = vrot.lane.b32.xlu1 %v634_v50, %s1592_s25  ;;  %v447_v62 = vadd.f32 %v406_v5, %v287_v16  ;;  %v745_v16 = vld [vmem:[%s2379_s4] sm:$0xff] }
 0x235   :  { %1417 = vmatmul.mubr.msk.bf16.vlgmr.msra.gmra.mxu1 %vm111_vm0, %v730_v48 }
 0x236   :  { %1420 = vmatprep.mubr.msk.bf16.mxu1 %vm111_vm0, %v731_v1  ;;  %v747_v1 = vld [vmem:[%s2379_s4 + $0x10] sm:$0xff] }
 0x26d   :  { %v408_v25 = vpop.permute.xlu1 %407 }
 0x26e   :  { %v448_v59 = vadd.f32 %v408_v25, %v288_v33 }
 0x270   :  { %v732_v4 = vpack.c.bf16 %v448_v59, %v447_v62  ;;  %v746_v62 = vld [vmem:[%s2379_s4 + $0x8] sm:$0xff] }
 0x271   :  { %v410_v43 = vpop.permute.xlu0 %409  ;;  %v412_v17 = vpop.permute.xlu1 %411 }
 0x272   :  { %v449_v31 = vadd.f32 %v410_v43, %v289_v21  ;;  %v450_v15 = vadd.f32 %v412_v17, %v290_v54  ;;  %1421 = vmatmul.mubr.msk.bf16.gmra.mxu1 %vm111_vm0, %v732_v4  ;;  %v748_v4 = vld [vmem:[%s2379_s4 + $0x18] sm:$0xff] }
 0x274   :  { %v733_v63 = vpack.c.bf16 %v450_v15, %v449_v31  ;;  %v751_v15 = vld [vmem:[%s2379_s4 + $0x30] sm:$0xff] }
 0x275   :  { %v414_v37 = vpop.permute.xlu0 %413  ;;  %v416_v23 = vpop.permute.xlu1 %415 }
 0x276   :  { %v451_v53 = vadd.f32 %v414_v37, %v291_v27  ;;  %v452_v58 = vadd.f32 %v416_v23, %v292_v35  ;;  %1424 = vmatprep.mubr.msk.bf16.mxu1 %vm111_vm0, %v733_v63  ;;  %v749_v37 = vld [vmem:[%s2379_s4 + $0x20] sm:$0xff]  ;;  %v752_v23 = vld [vmem:[%s2379_s4 + $0x38] sm:$0xff] }
 0x278   :  { %v734_v13 = vpack.c.bf16 %v452_v58, %v451_v53 }
 0x279   :  { %v418_v9 = vpop.permute.xlu0 %417 }
 0x27a   :  { %1425 = vmatmul.mubr.msk.bf16.gmra.mxu1 %vm111_vm0, %v734_v13  ;;  %v453_v39 = vadd.f32 %v418_v9, %v293_v0  ;;  %v750_v0 = vld [vmem:[%s2379_s4 + $0x28] sm:$0xff] }
 0x27d   :  { %v422_v11 = vpop.permute.xlu0 %421  ;;  %v420_v61 = vpop.permute.xlu1 %419 }
 0x27e   :  { %v454_v2 = vadd.f32 %v420_v61, %v294_v56  ;;  %v455_v46 = vadd.f32 %v422_v11, %v295_v41  ;;  %v755_v56 = vld [vmem:[%s2379_s4 + $0x50] sm:$0xff]  ;;  %v753_v41 = vld [vmem:[%s2379_s4 + $0x40] sm:$0xff] }
 0x280   :  { %v735_v14 = vpack.c.bf16 %v454_v2, %v453_v39 }
 0x281   :  { %v696_v44 = vpop.permute.xlu0 %695  ;;  %v424_v45 = vpop.permute.xlu1 %423 }
 0x282   :  { %v456_v49 = vadd.f32 %v424_v45, %v296_v51  ;;  %1428 = vmatprep.mubr.msk.bf16.mxu1 %vm111_vm0, %v735_v14  ;;  %v728_v8 = vmul.f32 %v696_v44, %v1794_v57  ;;  %v756_v14 = vld [vmem:[%s2379_s4 + $0x58] sm:$0xff] }
 0x284   :  { %v736_v10 = vpack.c.bf16 %v456_v49, %v455_v46 }
 0x285   :  { %v694_v19 = vpop.permute.xlu1 %693  ;;  %v692_v60 = vpop.permute.xlu0 %691 }
 0x286   :  { %v727_v29 = vmul.f32 %v694_v19, %v1779_v52  ;;  %1429 = vmatmul.mubr.msk.bf16.gmra.mxu1 %vm111_vm0, %v736_v10  ;;  %v726_v3 = vmul.f32 %v692_v60, %v1769_v47  ;;  %v754_v10 = vld [vmem:[%s2379_s4 + $0x48] sm:$0xff] }
 0x288   :  { %v1089_v6 = vpack.c.bf16 %v728_v8, %v727_v29  ;;  %v759_v8 = vld [vmem:[%s2379_s4 + $0x70] sm:$0xff] }
 0x289   :  { %v690_v50 = vpop.permute.xlu1 %689  ;;  %v2145_v12 = vpop.permute.xlu0 %681 }
 0x28a   :  { %v725_v7 = vmul.f32 %v690_v50, %v1756_v42  ;;  %1112 = vrot.lane.b32.xlu0 %v1089_v6, %s1592_s25 }
 0x28c   :  { %v1088_v55 = vpack.c.bf16 %v726_v3, %v725_v7  ;;  %v757_v3 = vld [vmem:[%s2379_s4 + $0x60] sm:$0xff] }
 0x28d   :  { %v2147_v48 = vpop.permute.xlu0 %677  ;;  %v686_v44 = vpop.permute.xlu1 %685 }
 0x28e   :  { %1110 = vrot.lane.b32.xlu0 %v1088_v55, %s1592_s25 }
 0x291   :  { %v2149_v57 = vpop.permute.xlu0 %673  ;;  %v688_v29 = vpop.permute.xlu1 %687 }
 0x295   :  { %v2151_v52 = vpop.permute.xlu0 %669  ;;  %v684_v7 = vpop.permute.xlu1 %683 }
 0x299   :  { %v2161_v33 = vpop.permute.xlu0 %665 }
 0x2f5   :  { %v1418_v47 = vpop.f32.mrf.mxu1 }
 0x2f6   :  { %v2156_v5 = vadd.f32 %v1418_v47, %v747_v1  ;;  %v680_v1 = vpop.permute.xlu1 %679  ;;  %v722_v47 = vmul.f32 %v684_v7, %v1750_v36 }
 0x2f7   :  { %v867_v42 = vpop.f32.mrf.mxu1 }
 0x2f8   :  { %934 = vmax.xlane.f32.xlu0 %v2156_v5  ;;  %v2167_v59 = vadd.f32 %v867_v42, %v745_v16  ;;  %v721_v42 = vmul.f32 %v2145_v12, %v1748_v34 }
 0x2f9   :  { %v1419_v25 = vpop.f32.mrf.mxu1 }
 0x2fa   :  { %v2175_v17 = vadd.f32 %v1419_v25, %v748_v4  ;;  %v676_v16 = vpop.permute.xlu1 %675  ;;  %v724_v25 = vmul.f32 %v688_v29, %v1754_v40  ;;  %v723_v4 = vmul.f32 %v686_v44, %v1752_v38  ;;  %v715_v40 = vmul.f32 %v2151_v52, %v1728_v22 }
 0x2fb   :  { %v870_v21 = vpop.f32.mrf.mxu1 }
 0x2fc   :  { %v2172_v54 = vadd.f32 %v870_v21, %v746_v62  ;;  %v1113_v43 = vpop.permute.xlu0 %1112  ;;  %930 = vmax.xlane.f32.xlu0 %v2167_v59  ;;  %v1086_v62 = vpack.c.bf16 %v722_v47, %v721_v42  ;;  %v1087_v21 = vpack.c.bf16 %v724_v25, %v723_v4 }
 0x2fd   :  { %1432 = vmatprep.subr.bf16.mxu0 %v1113_v43 }
 0x2fe   :  { %932 = vmax.xlane.f32.xlu1 %v2172_v54  ;;  %1433 = vmatpush3.bf16.msra.mxu0 %v1113_v43  ;;  %v720_v43 = vmul.f32 %v680_v1, %v1744_v32  ;;  %v760_v32 = vld [vmem:[%s2379_s4 + $0x78] sm:$0xff] }
 0x300   :  { %936 = vmax.xlane.f32.xlu0 %v2175_v17  ;;  %v1111_v31 = vpop.permute.xlu0 %1110 }
 0x301   :  { %1434 = vmatprep.subr.bf16.mxu0 %v1111_v31 }
 0x302   :  { %1435 = vmatpush3.bf16.msra.mxu0 %v1111_v31  ;;  %v672_v31 = vpop.permute.xlu1 %671 }
 0x303   :  { %v716_v34 = vmul.f32 %v672_v31, %v1732_v24  ;;  %v758_v24 = vld [vmem:[%s2379_s4 + $0x68] sm:$0xff] }
 0x305   :  { %v1083_v38 = vpack.c.bf16 %v716_v34, %v715_v40 }
 0x332   :  { %v1422_v63 = vpop.f32.mrf.mxu1 }
 0x333   :  { %v2182_v27 = vadd.f32 %v1422_v63, %v751_v15  ;;  %v719_v15 = vmul.f32 %v2147_v48, %v1742_v30 }
 0x334   :  { %v883_v35 = vpop.f32.mrf.mxu1 }
 0x335   :  { %942 = vmax.xlane.f32.xlu1 %v2182_v27  ;;  %v2191_v58 = vadd.f32 %v883_v35, %v749_v37  ;;  %v1085_v36 = vpack.c.bf16 %v720_v43, %v719_v15 }
 0x336   :  { %v1423_v53 = vpop.f32.mrf.mxu1 }
 0x337   :  { %v2193_v13 = vadd.f32 %v1423_v53, %v752_v23 }
 0x338   :  { %v886_v9 = vpop.f32.mrf.mxu1 }
 0x339   :  { %938 = vmax.xlane.f32.xlu1 %v2191_v58  ;;  %944 = vmax.xlane.f32.xlu0 %v2193_v13  ;;  %v2203_v61 = vadd.f32 %v886_v9, %v750_v0  ;;  %v718_v0 = vmul.f32 %v676_v16, %v1738_v28 }
 0x33a   :  { %v1426_v11 = vpop.f32.mrf.mxu1 }
 0x33b   :  { %v2205_v39 = vadd.f32 %v1426_v11, %v755_v56  ;;  %v717_v56 = vmul.f32 %v2149_v57, %v1736_v26 }
 0x33c   :  { %v899_v2 = vpop.f32.mrf.mxu1 }
 0x33d   :  { %950 = vmax.xlane.f32.xlu1 %v2205_v39  ;;  %940 = vmax.xlane.f32.xlu0 %v2203_v61  ;;  %v2215_v45 = vadd.f32 %v899_v2, %v753_v41  ;;  %v1084_v11 = vpack.c.bf16 %v718_v0, %v717_v56 }
 0x33e   :  { %v1427_v51 = vpop.f32.mrf.mxu1 }
 0x33f   :  { %v2217_v46 = vadd.f32 %v1427_v51, %v756_v14 }
 0x340   :  { %v902_v49 = vpop.f32.mrf.mxu1 }
 0x341   :  { %946 = vmax.xlane.f32.xlu1 %v2215_v45  ;;  %952 = vmax.xlane.f32.xlu0 %v2217_v46  ;;  %v2224_v19 = vadd.f32 %v902_v49, %v754_v10 }
 0x345   :  { %948 = vmax.xlane.f32.xlu0 %v2224_v19 }
 0x346   :  { %v1430_v60 = vpop.f32.mrf.mxu1 }
 0x347   :  { %v2230_v6 = vadd.f32 %v1430_v60, %v759_v8 }
 0x348   :  { %v915_v50 = vpop.f32.mrf.mxu1 }
 0x349   :  { %958 = vmax.xlane.f32.xlu1 %v2230_v6  ;;  %v2236_v55 = vadd.f32 %v915_v50, %v757_v3 }
 0x34a   :  { %v1431_v12 = vpop.f32.mrf.mxu1 }
 0x34b   :  { %v2257_v63 = vadd.f32 %v1431_v12, %v760_v32 }
 0x34c   :  { %v918_v30 = vpop.f32.mrf.mxu1 }
 0x34d   :  { %954 = vmax.xlane.f32.xlu1 %v2236_v55  ;;  %v2263_v22 = vadd.f32 %v918_v30, %v758_v24 }
 0x35b   :  { %1106 = vrot.lane.b32.xlu0 %v1086_v62, %s1592_s25 }
 0x35e   :  { %1108 = vrot.lane.b32.xlu1 %v1087_v21, %s1592_s25 }
 0x362   :  { %1104 = vrot.lane.b32.xlu1 %v1085_v36, %s1592_s25 }
 0x366   :  { %1100 = vrot.lane.b32.xlu1 %v1083_v38, %s1592_s25 }
 0x37a   :  { %960 = vmax.xlane.f32.xlu0 %v2257_v63 }
 0x37e   :  { %956 = vmax.xlane.f32.xlu0 %v2263_v22 }
 0x381   :  { %v935_v48 = vpop.xlane.xlu0 %934 }
 0x385   :  { %v931_v52 = vpop.xlane.xlu0 %930 }
 0x386   :  { %v962_v35 = vsub.f32 %v2167_v59, %v931_v52  ;;  %v2275_v59 = vpop.permute.xlu1 %667 }
 0x388   :  { %v978_v37 = vmul.f32 1.442695, %v962_v35 }
 0x389   :  { %v937_v23 = vpop.xlane.xlu0 %936 }
 0x38a   :  { %1503 = vpow2.f32 %v978_v37  ;;  %v965_v53 = vsub.f32 %v2175_v17, %v937_v23  ;;  %v964_v17 = vsub.f32 %v2156_v5, %v935_v48  ;;  %v933_v28 = vpop.xlane.xlu1 %932 }
 0x38b   :  { %v963_v51 = vsub.f32 %v2172_v54, %v933_v28 }
 0x38c   :  { %v984_v9 = vmul.f32 1.442695, %v965_v53  ;;  %v982_v14 = vmul.f32 1.442695, %v964_v17 }
 0x38d   :  { %v980_v26 = vmul.f32 1.442695, %v963_v51 }
 0x38e   :  { %1505 = vpow2.f32 %v984_v9 }
 0x38f   :  { %1507 = vpow2.f32 %v982_v14 }
 0x390   :  { %1509 = vpow2.f32 %v980_v26 }
 0x394   :  { %1102 = vrot.lane.b32.xlu0 %v1084_v11, %s1592_s25 }
 0x397   :  { %v2272_v2 = vpop.eup %1503 }
 0x398   :  { %1010 = vadd.xlane.f32.xlu1 %v2272_v2 }
 0x39b   :  { %v2277_v41 = vpop.eup %1505 }
 0x39c   :  { %1016 = vadd.xlane.f32.xlu1 %v2277_v41  ;;  %v2282_v57 = vpop.eup %1507 }
 0x39d   :  { %v2285_v44 = vpop.eup %1509 }
 0x3b3   :  { %1014 = vadd.xlane.f32.xlu0 %v2282_v57 }
 0x3b7   :  { %1012 = vadd.xlane.f32.xlu0 %v2285_v44 }
 0x3be   :  { %v943_v49 = vpop.xlane.xlu1 %942 }
 0x3bf   :  { %v968_v10 = vsub.f32 %v2182_v27, %v943_v49 }
 0x3c1   :  { %v990_v8 = vmul.f32 1.442695, %v968_v10 }
 0x3c2   :  { %v945_v5 = vpop.xlane.xlu0 %944  ;;  %v939_v29 = vpop.xlane.xlu1 %938 }
 0x3c3   :  { %1511 = vpow2.f32 %v990_v8  ;;  %v966_v54 = vsub.f32 %v2191_v58, %v939_v29  ;;  %v969_v60 = vsub.f32 %v2193_v13, %v945_v5 }
 0x3c5   :  { %v986_v50 = vmul.f32 1.442695, %v966_v54  ;;  %v992_v42 = vmul.f32 1.442695, %v969_v60 }
 0x3c6   :  { %v941_v3 = vpop.xlane.xlu0 %940  ;;  %v951_v7 = vpop.xlane.xlu1 %950 }
 0x3c7   :  { %v967_v1 = vsub.f32 %v2203_v61, %v941_v3  ;;  %v972_v47 = vsub.f32 %v2205_v39, %v951_v7  ;;  %1513 = vpow2.f32 %v986_v50 }
 0x3c9   :  { %v988_v16 = vmul.f32 1.442695, %v967_v1  ;;  %v998_v62 = vmul.f32 1.442695, %v972_v47 }
 0x3ca   :  { %v953_v25 = vpop.xlane.xlu0 %952  ;;  %v947_v27 = vpop.xlane.xlu1 %946 }
 0x3cb   :  { %1515 = vpow2.f32 %v988_v16  ;;  %v970_v4 = vsub.f32 %v2215_v45, %v947_v27  ;;  %v973_v58 = vsub.f32 %v2217_v46, %v953_v25 }
 0x3cc   :  { %1517 = vpow2.f32 %v992_v42 }
 0x3cd   :  { %v994_v13 = vmul.f32 1.442695, %v970_v4  ;;  %1519 = vpow2.f32 %v998_v62  ;;  %v1000_v39 = vmul.f32 1.442695, %v973_v58 }
 0x3ce   :  { %v949_v21 = vpop.xlane.xlu0 %948 }
 0x3cf   :  { %v971_v43 = vsub.f32 %v2224_v19, %v949_v21  ;;  %1521 = vpow2.f32 %v994_v13 }
 0x3d0   :  { %v2296_v61 = vpop.eup %1511 }
 0x3d1   :  { %v996_v31 = vmul.f32 1.442695, %v971_v43  ;;  %1022 = vadd.xlane.f32.xlu0 %v2296_v61 }
 0x3d2   :  { %v959_v15 = vpop.xlane.xlu1 %958  ;;  %v1107_v30 = vpop.permute.xlu0 %1106 }
 0x3d3   :  { %1523 = vpow2.f32 %v996_v31  ;;  %v976_v36 = vsub.f32 %v2230_v6, %v959_v15 }
 0x3d4   :  { %1525 = vpow2.f32 %v1000_v39  ;;  %v2300_v45 = vpop.eup %1513 }
 0x3d5   :  { %v1006_v46 = vmul.f32 1.442695, %v976_v36  ;;  %1018 = vadd.xlane.f32.xlu1 %v2300_v45 }
 0x3d6   :  { %v955_v34 = vpop.xlane.xlu1 %954 }
 0x3d7   :  { %1527 = vpow2.f32 %v1006_v46  ;;  %v974_v19 = vsub.f32 %v2236_v55, %v955_v34 }
 0x3d8   :  { %v2304_v40 = vpop.eup %1515 }
 0x3d9   :  { %v2306_v38 = vpop.eup %1517  ;;  %v1002_v32 = vmul.f32 1.442695, %v974_v19  ;;  %1020 = vadd.xlane.f32.xlu0 %v2304_v40 }
 0x3da   :  { %1024 = vadd.xlane.f32.xlu1 %v2306_v38  ;;  %v1109_v6 = vpop.permute.xlu1 %1108  ;;  %v2310_v12 = vpop.eup %1519 }
 0x3db   :  { %1529 = vpow2.f32 %v1002_v32  ;;  %1436 = vmatprep.subr.bf16.mxu0 %v1109_v6 }
 0x3dc   :  { %1437 = vmatpush3.bf16.msra.mxu0 %v1109_v6  ;;  %v2312_v24 = vpop.eup %1521 }
 0x3dd   :  { %1030 = vadd.xlane.f32.xlu0 %v2310_v12  ;;  %1438 = vmatprep.subr.bf16.mxu0 %v1107_v30 }
 0x3de   :  { %1026 = vadd.xlane.f32.xlu1 %v2312_v24  ;;  %v1105_v48 = vpop.permute.xlu1 %1104 }
 0x3e0   :  { %v2316_v55 = vpop.eup %1523  ;;  %1439 = vmatpush3.bf16.msra.mxu0 %v1107_v30 }
 0x3e1   :  { %v2318_v52 = vpop.eup %1525  ;;  %1028 = vadd.xlane.f32.xlu0 %v2316_v55  ;;  %1440 = vmatprep.subr.bf16.mxu0 %v1105_v48 }
 0x3e2   :  { %1032 = vadd.xlane.f32.xlu1 %v2318_v52  ;;  %v1101_v28 = vpop.permute.xlu1 %1100 }
 0x3e4   :  { %v2322_v35 = vpop.eup %1527  ;;  %1441 = vmatpush3.bf16.msra.mxu0 %v1105_v48 }
 0x3e5   :  { %1038 = vadd.xlane.f32.xlu0 %v2322_v35 }
 0x3e8   :  { %v2325_v37 = vpop.eup %1529 }
 0x3e9   :  { %1034 = vadd.xlane.f32.xlu1 %v2325_v37 }
 0x403   :  { %v961_v23 = vpop.xlane.xlu0 %960 }
 0x404   :  { %v977_v53 = vsub.f32 %v2257_v63, %v961_v23  ;;  %v714_v63 = vmul.f32 %v2275_v59, %v1724_v20 }
 0x406   :  { %v1008_v9 = vmul.f32 1.442695, %v977_v53 }
 0x407   :  { %v957_v0 = vpop.xlane.xlu0 %956 }
 0x408   :  { %1531 = vpow2.f32 %v1008_v9  ;;  %v975_v56 = vsub.f32 %v2263_v22, %v957_v0  ;;  %v713_v22 = vmul.f32 %v2161_v33, %v1720_v18 }
 0x40a   :  { %v1004_v11 = vmul.f32 1.442695, %v975_v56  ;;  %v1082_v26 = vpack.c.bf16 %v714_v63, %v713_v22 }
 0x40b   :  { %v1103_v17 = vpop.permute.xlu0 %1102 }
 0x40c   :  { %1533 = vpow2.f32 %v1004_v11  ;;  %1442 = vmatprep.subr.bf16.mxu0 %v1103_v17 }
 0x40d   :  { %1443 = vmatpush3.bf16.msra.mxu0 %v1103_v17 }
 0x40e   :  { %1444 = vmatprep.subr.bf16.mxu0 %v1101_v28 }
 0x411   :  { %1445 = vmatpush3.bf16.msra.mxu0 %v1101_v28 }
 0x415   :  { %v2330_v14 = vpop.eup %1531 }
 0x416   :  { %1040 = vadd.xlane.f32.xlu1 %v2330_v14 }
 0x419   :  { %v2333_v51 = vpop.eup %1533 }
 0x41a   :  { %1036 = vadd.xlane.f32.xlu0 %v2333_v51 }
 0x421   :  { %v1011_v49 = vpop.xlane.xlu1 %1010 }
 0x422   :  { %1535 = vrcp.f32 %v1011_v49 }
 0x425   :  { %v1017_v59 = vpop.xlane.xlu1 %1016 }
 0x42f   :  { %v1536_v5 = vpop.eup %1535 }
 0x430   :  { %1098 = vrot.lane.b32.xlu0 %v1082_v26, %s1592_s25  ;;  %v1058_v54 = vmul.f32 %v1536_v5, %v2272_v2 }
 0x43c   :  { %v1015_v10 = vpop.xlane.xlu0 %1014 }
 0x440   :  { %v1013_v8 = vpop.xlane.xlu0 %1012 }
 0x441   :  { %1537 = vrcp.f32 %v1013_v8 }
 0x442   :  { %1539 = vrcp.f32 %v1015_v10 }
 0x44e   :  { %v1538_v29 = vpop.eup %1537 }
 0x44f   :  { %v1059_v60 = vmul.f32 %v1538_v29, %v2285_v44  ;;  %v1540_v44 = vpop.eup %1539 }
 0x450   :  { %v1060_v58 = vmul.f32 %v1540_v44, %v2282_v57 }
 0x451   :  { %v1074_v50 = vpack.c.bf16 %v1059_v60, %v1058_v54 }
 0x453   :  { %1448 = vmatprep.mubr.bf16.mxu0 %v1074_v50 }
 0x45a   :  { %v1023_v20 = vpop.xlane.xlu0 %1022 }
 0x45e   :  { %v1019_v18 = vpop.xlane.xlu1 %1018 }
 0x462   :  { %v1021_v3 = vpop.xlane.xlu0 %1020 }
 0x463   :  { %v1025_v7 = vpop.xlane.xlu1 %1024  ;;  %1541 = vrcp.f32 %v1021_v3 }
 0x464   :  { %1543 = vrcp.f32 %v1017_v59 }
 0x465   :  { %1545 = vrcp.f32 %v1019_v18 }
 0x466   :  { %v1031_v33 = vpop.xlane.xlu0 %1030  ;;  %1547 = vrcp.f32 %v1025_v7 }
 0x467   :  { %v1027_v47 = vpop.xlane.xlu1 %1026 }
 0x46a   :  { %v1029_v1 = vpop.xlane.xlu0 %1028 }
 0x46b   :  { %1549 = vrcp.f32 %v1029_v1  ;;  %v1033_v2 = vpop.xlane.xlu1 %1032 }
 0x46c   :  { %1551 = vrcp.f32 %v1023_v20 }
 0x46d   :  { %1553 = vrcp.f32 %v1027_v47 }
 0x46e   :  { %v1039_v42 = vpop.xlane.xlu0 %1038  ;;  %1555 = vrcp.f32 %v1033_v2 }
 0x470   :  { %v1542_v25 = vpop.eup %1541 }
 0x471   :  { %v1544_v27 = vpop.eup %1543  ;;  %v1063_v21 = vmul.f32 %v1542_v25, %v2304_v40 }
 0x472   :  { %v1546_v62 = vpop.eup %1545  ;;  %v1035_v4 = vpop.xlane.xlu1 %1034  ;;  %v1061_v43 = vmul.f32 %v1544_v27, %v2277_v41 }
 0x473   :  { %v1062_v39 = vmul.f32 %v1546_v62, %v2300_v45  ;;  %v1548_v15 = vpop.eup %1547 }
 0x474   :  { %v1075_v31 = vpack.c.bf16 %v1061_v43, %v1060_v58  ;;  %v1065_v40 = vmul.f32 %v1548_v15, %v2306_v38 }
 0x475   :  { %v1076_v46 = vpack.c.bf16 %v1063_v21, %v1062_v39 }
 0x478   :  { %v1550_v34 = vpop.eup %1549 }
 0x479   :  { %v1552_v19 = vpop.eup %1551  ;;  %v1067_v32 = vmul.f32 %v1550_v34, %v2316_v55 }
 0x47a   :  { %v1554_v57 = vpop.eup %1553  ;;  %v1064_v41 = vmul.f32 %v1552_v19, %v2296_v61 }
 0x47b   :  { %v1066_v6 = vmul.f32 %v1554_v57, %v2312_v24  ;;  %v1556_v30 = vpop.eup %1555 }
 0x47c   :  { %v1077_v45 = vpack.c.bf16 %v1065_v40, %v1064_v41  ;;  %v1069_v0 = vmul.f32 %v1556_v30, %v2318_v52  ;;  %v1501_v52 = vld [vmem:[%s2381_s6 + $0x8] sm:$0xff]  }
 0x47d   :  { %v1078_v48 = vpack.c.bf16 %v1067_v32, %v1066_v6  ;;  %1464 = vmatprep.subr.bf16.mxu1 %v1501_v52 }
 0x47e   :  { %1465 = vmatpush3.bf16.msra.mxu1 %v1501_v52 }
 0x49f   :  { %v1041_v36 = vpop.xlane.xlu1 %1040 }
 0x4a3   :  { %v1037_v16 = vpop.xlane.xlu0 %1036 }
 0x4a4   :  { %1557 = vrcp.f32 %v1037_v16 }
 0x4a5   :  { %1559 = vrcp.f32 %v1031_v33 }
 0x4a6   :  { %1561 = vrcp.f32 %v1035_v4 }
 0x4a7   :  { %v1099_v13 = vpop.permute.xlu0 %1098  ;;  %1563 = vrcp.f32 %v1041_v36 }
 0x4a8   :  { %1446 = vmatprep.subr.bf16.mxu0 %v1099_v13  ;;  %1565 = vrcp.f32 %v1039_v42 }
 0x4a9   :  { %1447 = vmatpush3.bf16.msra.mxu0 %v1099_v13  ;;  %v1359_v13 = vld [vmem:[%s2382_s7] ss:$0 sm:$0xff]  ;;  %s1567_s7 = scalar_lea.vmem %s1321_s0, 512 }
 0x4aa   :  { %p1568_p0 = scmp.ne.s32.totalorder %s1321_s0, %s1567_s7  ;;  %p1573_p2 = scmp.lt.s32.totalorder %s1567_s7, %s1567_s7 }
 0x4ac   :  { %1449 = vmatmul.mubr.bf16.vlgmr.msra.gmra.mxu0 %v1075_v31  ;;  %p1574_p3 = por %p1573_p2, %p1572_p1 }
 0x4ad   :  { %1452 = vmatprep.mubr.bf16.mxu0 %v1076_v46 }
 0x4ae   :  { %p1575_p4 = pnand %p1574_p3, %p1568_p0 }
 0x4b1   :  { %v1558_v23 = vpop.eup %1557 }
 0x4b2   :  { %v1560_v53 = vpop.eup %1559  ;;  %v1071_v56 = vmul.f32 %v1558_v23, %v2333_v51 }
 0x4b3   :  { %v1562_v9 = vpop.eup %1561  ;;  %v1068_v38 = vmul.f32 %v1560_v53, %v2310_v12  ;;  %v1502_v12 = vld [vmem:[%s2381_s6] sm:$0xff]  }
 0x4b4   :  { %1453 = vmatmul.mubr.bf16.gmra.mxu0 %v1077_v45  ;;  %v1070_v55 = vmul.f32 %v1562_v9, %v2325_v37  ;;  %v1564_v61 = vpop.eup %1563  ;;  %1466 = vmatprep.subr.bf16.mxu1 %v1502_v12 }
 0x4b5   :  { %1456 = vmatprep.mubr.bf16.mxu0 %v1078_v48  ;;  %v1079_v11 = vpack.c.bf16 %v1069_v0, %v1068_v38  ;;  %v1566_v24 = vpop.eup %1565  ;;  %v1073_v28 = vmul.f32 %v1564_v61, %v2330_v14  ;;  %1467 = vmatpush3.bf16.msra.mxu1 %v1502_v12 }
 0x4b6   :  { %v1080_v17 = vpack.c.bf16 %v1071_v56, %v1070_v55  ;;  %v1072_v63 = vmul.f32 %v1566_v24, %v2322_v35 }
 0x4b8   :  { %v1081_v22 = vpack.c.bf16 %v1073_v28, %v1072_v63 }
 0x4bc   :  { %1457 = vmatmul.mubr.bf16.gmra.mxu0 %v1079_v11 }
 0x4bd   :  { %1460 = vmatprep.mubr.bf16.mxu0 %v1080_v17 }
 0x4c4   :  { %1461 = vmatmul.mubr.bf16.gmra.mxu0 %v1081_v22 }
 0x56c   :  { %v1450_v37 = vpop.f32.mrf.mxu0 }
 0x56e   :  { %v1156_v51 = vpop.f32.mrf.mxu0 }
 0x570   :  { %v1451_v26 = vpop.f32.mrf.mxu0 }
 0x572   :  { %v1159_v14 = vpop.f32.mrf.mxu0 }
 0x573   :  { %v1219_v10 = vadd.f32 %v1159_v14, %v1156_v51 }
 0x574   :  { %v1454_v49 = vpop.f32.mrf.mxu0 }
 0x575   :  { %v1220_v29 = vadd.f32 %v1450_v37, %v1219_v10 }
 0x576   :  { %v1172_v35 = vpop.f32.mrf.mxu0 }
 0x577   :  { %v1221_v59 = vadd.f32 %v1451_v26, %v1220_v29 }
 0x578   :  { %v1455_v8 = vpop.f32.mrf.mxu0 }
 0x57a   :  { %v1175_v5 = vpop.f32.mrf.mxu0 }
 0x57b   :  { %v1222_v54 = vadd.f32 %v1175_v5, %v1172_v35 }
 0x57c   :  { %v1458_v60 = vpop.f32.mrf.mxu0 }
 0x57d   :  { %v1223_v50 = vadd.f32 %v1454_v49, %v1222_v54 }
 0x57e   :  { %v1188_v20 = vpop.f32.mrf.mxu0 }
 0x57f   :  { %v1224_v3 = vadd.f32 %v1455_v8, %v1223_v50 }
 0x580   :  { %v1459_v18 = vpop.f32.mrf.mxu0 }
 0x581   :  { %v1231_v33 = vpack.c.bf16 %v1224_v3, %v1221_v59 }
 0x582   :  { %v1191_v7 = vpop.f32.mrf.mxu0 }
 0x583   :  { %1468 = vmatprep.mubr.msk.bf16.mxu1 %vm111_vm0, %v1231_v33  ;;  %v1225_v42 = vadd.f32 %v1191_v7, %v1188_v20 }
 0x584   :  { %v1462_v1 = vpop.f32.mrf.mxu0 }
 0x585   :  { %v1226_v16 = vadd.f32 %v1458_v60, %v1225_v42 }
 0x586   :  { %v1204_v47 = vpop.f32.mrf.mxu0 }
 0x587   :  { %v1227_v62 = vadd.f32 %v1459_v18, %v1226_v16 }
 0x588   :  { %v1463_v2 = vpop.f32.mrf.mxu0 }
 0x58a   :  { %v1207_v44 = vpop.f32.mrf.mxu0 }
 0x58b   :  { %v1228_v25 = vadd.f32 %v1207_v44, %v1204_v47 }
 0x58d   :  { %v1229_v27 = vadd.f32 %v1462_v1, %v1228_v25 }
 0x58f   :  { %v1230_v4 = vadd.f32 %v1463_v2, %v1229_v27 }
 0x591   :  { %v1232_v58 = vpack.c.bf16 %v1230_v4, %v1227_v62 }
 0x593   :  { %1469 = vmatmul.mubr.msk.bf16.vlgmr.msra.gmra.mxu1 %vm111_vm0, %v1232_v58 }
 0x653   :  { %v1470_v21 = vpop.f32.mrf.mxu1 }
 0x654   :  { %v1305_v43 = vadd.f32 %v1470_v21, %v1359_v13 }
 0x655   :  { %v1296_v39 = vpop.f32.mrf.mxu1 }
 0x656   :  { %1313 = vst.msk [vmem:[#allocation2 + $0x10] sm:$0xff] %vm111_vm0, %v1305_v43  ;;  %v1297_v31 = vadd.f32 %v1359_v13, %v1296_v39 }
 0x657   :  { %v1471_v15 = vpop.f32.mrf.mxu1 }
 0x658   :  { %1311 = vst.msk [vmem:[#allocation2] sm:$0xff] %vm111_vm0, %v1297_v31  ;;  %v1308_v36 = vadd.f32 %v1471_v15, %v1359_v13 }
 0x659   :  { %v1299_v46 = vpop.f32.mrf.mxu1 }
 0x65a   :  { %1314 = vst.msk [vmem:[#allocation2 + $0x18] sm:$0xff] %vm111_vm0, %v1308_v36  ;;  %v1300_v34 = vadd.f32 %v1359_v13, %v1299_v46 }
 0x65c   :  { %1312 = vst.msk [vmem:[#allocation2 + $0x8] sm:$0xff] %vm111_vm0, %v1300_v34 }
 0x65d   :  { %1578 = shalt.err (!%p1575_p4)
}
 0x65e   :  { %s1594_s5 = smov 128   ;;  %s1595_s18 = smov 8  }
 0x65f   :  { %1326 = dma.vmem_to_hbm [thread:$0]  %s1321_s0, 512, %s2383_s8, [#allocation3], %s1594_s5, %s1594_s5, %s1595_s18  }
 0x660   :  { %1587 = dma.done.wait [#allocation3], 512  }
 0x661   :  { %1588 = vsyncadd [#allocation3], 4294966784 }
 0x662   :  { %1330 = vsyncpa [#allocation3], 1 }

</bundles_post_ra>
